<compile_context>
chip_gen: v7x
topology: tpu7x:2x2x1
jax: 0.10.0
libtpu: 0.0.40
codegen_flags: <defaults>
</compile_context>

<pallas_src>
import functools
import math

import jax
import jax.numpy as jnp
from jax.experimental import pallas as pl
from jax.experimental.pallas import tpu as pltpu

_LANE_WIDTH = 1024        # slab last dim (multiple of 128) -> lane-dense stores
_MAX_BLOCK_ROWS = 512     # 512 x 1024 x 4B = 2 MiB f32 output block
_MIN_PALLAS_ELEMS = 1024  # below this, plain XLA RNG beats a kernel launch

_THREEFRY_ROTATIONS = (13, 15, 26, 6, 17, 29, 16, 24)


def _round_up(x, m):
    return ((x + m - 1) // m) * m


def _rotl32(x, r):
    return (x << r) | (x >> (32 - r))


def _threefry2x32(k0, k1, x0, x1):
    """Standard threefry-2x32 (20 rounds) on uint32 vectors; pure VPU ops."""
    k2 = k0 ^ k1 ^ jnp.uint32(0x1BD11BDA)
    ks = (k0, k1, k2)
    x0 = x0 + ks[0]
    x1 = x1 + ks[1]
    for blk in range(5):
        rots = _THREEFRY_ROTATIONS[(blk % 2) * 4:(blk % 2) * 4 + 4]
        for r in rots:
            x0 = x0 + x1
            x1 = _rotl32(x1, r)
            x1 = x0 ^ x1
        x0 = x0 + ks[(blk + 1) % 3]
        x1 = x1 + ks[(blk + 2) % 3] + jnp.uint32(blk + 1)
    return x0, x1


def _bits_to_one_two(bits):
    """uint32 random bits -> f32 in [1, 2) via the mantissa trick (23 bits)."""
    return jax.lax.bitcast_convert_type(
        (bits >> 9) | jnp.uint32(0x3F800000), jnp.float32)


def _random_normal_kernel(seed_ref, out_ref, *, mean, stddev):
    """Fill one (TM, 1024) output block with i.i.d. N(mean, stddev^2) samples."""
    tm = out_ref.shape[0]
    half = out_ref.shape[1] // 2
    i = pl.program_id(0)

    # Global, block-geometry-independent per-element counters for the half-slab.
    row = jax.lax.broadcasted_iota(jnp.int32, (tm, half), 0) + i * tm
    col = jax.lax.broadcasted_iota(jnp.int32, (tm, half), 1)
    x0 = row.astype(jnp.uint32)
    x1 = col.astype(jnp.uint32)

    k0 = seed_ref[0].astype(jnp.uint32)
    k1 = jnp.uint32(0x9E3779B9)

    b0, b1 = _threefry2x32(k0, k1, x0, x1)   # one draw -> two normals

    f1 = _bits_to_one_two(b0)                # in [1, 2)
    f2 = _bits_to_one_two(b1)                # in [1, 2)

    # Discard-free Box-Muller.
    #   u1' = 2 - f1 in (0, 1]  -> finite log (folds "f-1" and "1-u" together)
    #   theta = 2*pi*f2 with f2 in [1, 2): cos/sin are 2*pi-periodic, no "-1".
    r = jnp.sqrt(-2.0 * jnp.log(2.0 - f1))
    theta = jnp.float32(2.0 * math.pi) * f2
    zc = r * jnp.cos(theta)
    zs = r * jnp.sin(theta)

    m = jnp.float32(mean)
    s = jnp.float32(stddev)
    out_ref[:, :half] = (m + s * zc).astype(out_ref.dtype)
    out_ref[:, half:] = (m + s * zs).astype(out_ref.dtype)


def random_normal_initializer_forward(shape, *, mean=0.0, stddev=0.05,
                                      dtype=None, seed=0):
    """JAX/Pallas equivalent of RandomNormalInitializer(mean, stddev).forward(shape, dtype)."""
    if dtype is None:
        dtype = jnp.float32
    dtype = jnp.dtype(dtype)
    shape = tuple(int(s) for s in shape)
    total = int(math.prod(shape)) if shape else 1

    if total == 0:
        return jnp.zeros(shape, dtype)

    if total < _MIN_PALLAS_ELEMS:
        # Small-output fast path: kernel-launch overhead dominates, use XLA RNG.
        # TODO(synk): this path uses a different PRNG stream than the Pallas path.
        key = jax.random.PRNGKey(int(seed))
        sample = jax.random.normal(key, shape, dtype=jnp.float32)
        return (mean + stddev * sample).astype(dtype)

    # Packed-sublane multiple: 8 for f32, 16 for bf16, 32 for int8/fp8.
    sub = 8 * max(1, 4 // dtype.itemsize)
    rows = pl.cdiv(total, _LANE_WIDTH)
    rows_pad = _round_up(rows, sub)

    if rows_pad <= _MAX_BLOCK_ROWS:
        # Split into >=2 parallel steps when possible so v7x's 2nd TC has work.
        tm = _round_up(pl.cdiv(rows_pad, 2), sub) if rows_pad > sub else rows_pad
    else:
        tm = _MAX_BLOCK_ROWS
    grid = (pl.cdiv(rows_pad, tm),)   # ragged last block is masked by Pallas

    seed_arr = jnp.asarray([seed], dtype=jnp.int32)
    kernel = functools.partial(_random_normal_kernel,
                               mean=float(mean), stddev=float(stddev))

    slab = pl.pallas_call(
        kernel,
        out_shape=jax.ShapeDtypeStruct((rows_pad, _LANE_WIDTH), dtype),
        grid_spec=pltpu.PrefetchScalarGridSpec(
            num_scalar_prefetch=1,          # seed lands in SMEM
            grid=grid,
            in_specs=[],                    # no tensor inputs at all
            out_specs=pl.BlockSpec((tm, _LANE_WIDTH), lambda i, seed: (i, 0)),
        ),
        compiler_params=pltpu.CompilerParams(
            dimension_semantics=("parallel",),
            vmem_limit_bytes=32 * 1024 * 1024,   # safe on v5e/v6e/v7x
        ),
    )(seed_arr)

    # Drop padding and reshape to the requested (e.g. NCHW) shape.
    return slab.reshape(-1)[:total].reshape(shape)


if __name__ == "__main__":
    key = jax.random.PRNGKey(0)
    seed = int(jax.random.randint(key, (), 0, 2**31 - 1, dtype=jnp.int32))

    # --- Case 1: default Norm(0.0, 0.05), NCHW-like shape --------------------
    shape1 = (2, 4, 16, 16)
    out1 = random_normal_initializer_forward(shape1, mean=0.0, stddev=0.05,
                                             dtype=jnp.float32, seed=seed)
    out1 = jax.block_until_ready(out1)
    assert out1.shape == shape1, out1.shape
    assert out1.dtype == jnp.float32, out1.dtype
    assert bool(jnp.all(jnp.isfinite(out1)))
    m1 = float(jnp.mean(out1))
    s1 = float(jnp.std(out1))
    assert abs(m1 - 0.0) < 0.01, f"sample mean off: {m1}"
    assert abs(s1 - 0.05) < 0.01, f"sample std off: {s1}"

    # Determinism: same seed -> identical tensor.
    out1b = jax.block_until_ready(
        random_normal_initializer_forward(shape1, mean=0.0, stddev=0.05,
                                          dtype=jnp.float32, seed=seed))
    assert bool(jnp.array_equal(out1, out1b)), "same seed should reproduce"

    # --- Case 2: nonzero mean, bfloat16 output (seq=8, hidden=128) -----------
    shape2 = (2, 8, 128)
    out2 = random_normal_initializer_forward(shape2, mean=1.0, stddev=0.1,
                                             dtype=jnp.bfloat16, seed=seed + 1)
    out2 = jax.block_until_ready(out2)
    assert out2.shape == shape2 and out2.dtype == jnp.bfloat16
    m2 = float(jnp.mean(out2.astype(jnp.float32)))
    s2 = float(jnp.std(out2.astype(jnp.float32)))
    assert abs(m2 - 1.0) < 0.03, f"sample mean off: {m2}"
    assert abs(s2 - 0.1) < 0.03, f"sample std off: {s2}"

    # --- Case 3: tiny shape exercises the non-Pallas fast path ---------------
    shape3 = (4, 8)
    out3 = jax.block_until_ready(
        random_normal_initializer_forward(shape3, mean=0.0, stddev=0.05, seed=seed))
    assert out3.shape == shape3

    print("KERNEL_OK")
</pallas_src>

<mosaic_0001>
module attributes {stable_mosaic.version = 11 : i64} {
  func.func @_random_normal_kernel(%arg0: i32, %arg1: memref<1xi32, #tpu.memory_space<smem>>, %arg2: memref<8x1024xf32, #tpu.memory_space<vmem>>) attributes {dimension_semantics = [#tpu.dimension_semantics<parallel>], iteration_bounds = array<i64: 1>, scalar_prefetch = 1 : i64, scratch_operands = 0 : i64, tpu.core_type = #tpu.core_type<tc>, window_params = [{transform_indices = @transform_0, window_bounds = array<i64: 8, 1024>}]} {
    %0 = tpu.iota {dimensions = array<i32: 0>} : vector<8x512xi32>
    %c8_i32 = arith.constant 8 : i32
    %1 = arith.muli %arg0, %c8_i32 : i32
    %2 = vector.broadcast %1 : i32 to vector<8x512xi32>
    %3 = arith.addi %0, %2 : vector<8x512xi32>
    %4 = tpu.iota {dimensions = array<i32: 1>} : vector<8x512xi32>
    %c0 = arith.constant 0 : index
    %5 = memref.load %arg1[%c0] : memref<1xi32, #tpu.memory_space<smem>>
    %c-1640531527_i32 = arith.constant -1640531527 : i32
    %6 = arith.xori %5, %c-1640531527_i32 : i32
    %c466688986_i32 = arith.constant 466688986 : i32
    %7 = arith.xori %6, %c466688986_i32 : i32
    %8 = vector.broadcast %5 : i32 to vector<8x512xi32>
    %9 = arith.addi %3, %8 : vector<8x512xi32>
    %c-1640531527_i32_0 = arith.constant -1640531527 : i32
    %10 = vector.broadcast %c-1640531527_i32_0 : i32 to vector<8x512xi32>
    %11 = arith.addi %4, %10 : vector<8x512xi32>
    %12 = arith.addi %9, %11 : vector<8x512xi32>
    %c13_i32 = arith.constant 13 : i32
    %13 = vector.broadcast %c13_i32 : i32 to vector<8x512xi32>
    %14 = arith.shli %11, %13 : vector<8x512xi32>
    %c19_i32 = arith.constant 19 : i32
    %15 = vector.broadcast %c19_i32 : i32 to vector<8x512xi32>
    %16 = arith.shrui %11, %15 : vector<8x512xi32>
    %17 = arith.ori %14, %16 : vector<8x512xi32>
    %18 = arith.xori %12, %17 : vector<8x512xi32>
    %19 = arith.addi %12, %18 : vector<8x512xi32>
    %c15_i32 = arith.constant 15 : i32
    %20 = vector.broadcast %c15_i32 : i32 to vector<8x512xi32>
    %21 = arith.shli %18, %20 : vector<8x512xi32>
    %c17_i32 = arith.constant 17 : i32
    %22 = vector.broadcast %c17_i32 : i32 to vector<8x512xi32>
    %23 = arith.shrui %18, %22 : vector<8x512xi32>
    %24 = arith.ori %21, %23 : vector<8x512xi32>
    %25 = arith.xori %19, %24 : vector<8x512xi32>
    %26 = arith.addi %19, %25 : vector<8x512xi32>
    %c26_i32 = arith.constant 26 : i32
    %27 = vector.broadcast %c26_i32 : i32 to vector<8x512xi32>
    %28 = arith.shli %25, %27 : vector<8x512xi32>
    %c6_i32 = arith.constant 6 : i32
    %29 = vector.broadcast %c6_i32 : i32 to vector<8x512xi32>
    %30 = arith.shrui %25, %29 : vector<8x512xi32>
    %31 = arith.ori %28, %30 : vector<8x512xi32>
    %32 = arith.xori %26, %31 : vector<8x512xi32>
    %33 = arith.addi %26, %32 : vector<8x512xi32>
    %c6_i32_1 = arith.constant 6 : i32
    %34 = vector.broadcast %c6_i32_1 : i32 to vector<8x512xi32>
    %35 = arith.shli %32, %34 : vector<8x512xi32>
    %c26_i32_2 = arith.constant 26 : i32
    %36 = vector.broadcast %c26_i32_2 : i32 to vector<8x512xi32>
    %37 = arith.shrui %32, %36 : vector<8x512xi32>
    %38 = arith.ori %35, %37 : vector<8x512xi32>
    %39 = arith.xori %33, %38 : vector<8x512xi32>
    %c-1640531527_i32_3 = arith.constant -1640531527 : i32
    %40 = vector.broadcast %c-1640531527_i32_3 : i32 to vector<8x512xi32>
    %41 = arith.addi %33, %40 : vector<8x512xi32>
    %42 = vector.broadcast %7 : i32 to vector<8x512xi32>
    %43 = arith.addi %39, %42 : vector<8x512xi32>
    %c1_i32 = arith.constant 1 : i32
    %44 = vector.broadcast %c1_i32 : i32 to vector<8x512xi32>
    %45 = arith.addi %43, %44 : vector<8x512xi32>
    %46 = arith.addi %41, %45 : vector<8x512xi32>
    %c17_i32_4 = arith.constant 17 : i32
    %47 = vector.broadcast %c17_i32_4 : i32 to vector<8x512xi32>
    %48 = arith.shli %45, %47 : vector<8x512xi32>
    %c15_i32_5 = arith.constant 15 : i32
    %49 = vector.broadcast %c15_i32_5 : i32 to vector<8x512xi32>
    %50 = arith.shrui %45, %49 : vector<8x512xi32>
    %51 = arith.ori %48, %50 : vector<8x512xi32>
    %52 = arith.xori %46, %51 : vector<8x512xi32>
    %53 = arith.addi %46, %52 : vector<8x512xi32>
    %c29_i32 = arith.constant 29 : i32
    %54 = vector.broadcast %c29_i32 : i32 to vector<8x512xi32>
    %55 = arith.shli %52, %54 : vector<8x512xi32>
    %c3_i32 = arith.constant 3 : i32
    %56 = vector.broadcast %c3_i32 : i32 to vector<8x512xi32>
    %57 = arith.shrui %52, %56 : vector<8x512xi32>
    %58 = arith.ori %55, %57 : vector<8x512xi32>
    %59 = arith.xori %53, %58 : vector<8x512xi32>
    %60 = arith.addi %53, %59 : vector<8x512xi32>
    %c16_i32 = arith.constant 16 : i32
    %61 = vector.broadcast %c16_i32 : i32 to vector<8x512xi32>
    %62 = arith.shli %59, %61 : vector<8x512xi32>
    %c16_i32_6 = arith.constant 16 : i32
    %63 = vector.broadcast %c16_i32_6 : i32 to vector<8x512xi32>
    %64 = arith.shrui %59, %63 : vector<8x512xi32>
    %65 = arith.ori %62, %64 : vector<8x512xi32>
    %66 = arith.xori %60, %65 : vector<8x512xi32>
    %67 = arith.addi %60, %66 : vector<8x512xi32>
    %c24_i32 = arith.constant 24 : i32
    %68 = vector.broadcast %c24_i32 : i32 to vector<8x512xi32>
    %69 = arith.shli %66, %68 : vector<8x512xi32>
    %c8_i32_7 = arith.constant 8 : i32
    %70 = vector.broadcast %c8_i32_7 : i32 to vector<8x512xi32>
    %71 = arith.shrui %66, %70 : vector<8x512xi32>
    %72 = arith.ori %69, %71 : vector<8x512xi32>
    %73 = arith.xori %67, %72 : vector<8x512xi32>
    %74 = vector.broadcast %7 : i32 to vector<8x512xi32>
    %75 = arith.addi %67, %74 : vector<8x512xi32>
    %76 = vector.broadcast %5 : i32 to vector<8x512xi32>
    %77 = arith.addi %73, %76 : vector<8x512xi32>
    %c2_i32 = arith.constant 2 : i32
    %78 = vector.broadcast %c2_i32 : i32 to vector<8x512xi32>
    %79 = arith.addi %77, %78 : vector<8x512xi32>
    %80 = arith.addi %75, %79 : vector<8x512xi32>
    %c13_i32_8 = arith.constant 13 : i32
    %81 = vector.broadcast %c13_i32_8 : i32 to vector<8x512xi32>
    %82 = arith.shli %79, %81 : vector<8x512xi32>
    %c19_i32_9 = arith.constant 19 : i32
    %83 = vector.broadcast %c19_i32_9 : i32 to vector<8x512xi32>
    %84 = arith.shrui %79, %83 : vector<8x512xi32>
    %85 = arith.ori %82, %84 : vector<8x512xi32>
    %86 = arith.xori %80, %85 : vector<8x512xi32>
    %87 = arith.addi %80, %86 : vector<8x512xi32>
    %c15_i32_10 = arith.constant 15 : i32
    %88 = vector.broadcast %c15_i32_10 : i32 to vector<8x512xi32>
    %89 = arith.shli %86, %88 : vector<8x512xi32>
    %c17_i32_11 = arith.constant 17 : i32
    %90 = vector.broadcast %c17_i32_11 : i32 to vector<8x512xi32>
    %91 = arith.shrui %86, %90 : vector<8x512xi32>
    %92 = arith.ori %89, %91 : vector<8x512xi32>
    %93 = arith.xori %87, %92 : vector<8x512xi32>
    %94 = arith.addi %87, %93 : vector<8x512xi32>
    %c26_i32_12 = arith.constant 26 : i32
    %95 = vector.broadcast %c26_i32_12 : i32 to vector<8x512xi32>
    %96 = arith.shli %93, %95 : vector<8x512xi32>
    %c6_i32_13 = arith.constant 6 : i32
    %97 = vector.broadcast %c6_i32_13 : i32 to vector<8x512xi32>
    %98 = arith.shrui %93, %97 : vector<8x512xi32>
    %99 = arith.ori %96, %98 : vector<8x512xi32>
    %100 = arith.xori %94, %99 : vector<8x512xi32>
    %101 = arith.addi %94, %100 : vector<8x512xi32>
    %c6_i32_14 = arith.constant 6 : i32
    %102 = vector.broadcast %c6_i32_14 : i32 to vector<8x512xi32>
    %103 = arith.shli %100, %102 : vector<8x512xi32>
    %c26_i32_15 = arith.constant 26 : i32
    %104 = vector.broadcast %c26_i32_15 : i32 to vector<8x512xi32>
    %105 = arith.shrui %100, %104 : vector<8x512xi32>
    %106 = arith.ori %103, %105 : vector<8x512xi32>
    %107 = arith.xori %101, %106 : vector<8x512xi32>
    %108 = vector.broadcast %5 : i32 to vector<8x512xi32>
    %109 = arith.addi %101, %108 : vector<8x512xi32>
    %c-1640531527_i32_16 = arith.constant -1640531527 : i32
    %110 = vector.broadcast %c-1640531527_i32_16 : i32 to vector<8x512xi32>
    %111 = arith.addi %107, %110 : vector<8x512xi32>
    %c3_i32_17 = arith.constant 3 : i32
    %112 = vector.broadcast %c3_i32_17 : i32 to vector<8x512xi32>
    %113 = arith.addi %111, %112 : vector<8x512xi32>
    %114 = arith.addi %109, %113 : vector<8x512xi32>
    %c17_i32_18 = arith.constant 17 : i32
    %115 = vector.broadcast %c17_i32_18 : i32 to vector<8x512xi32>
    %116 = arith.shli %113, %115 : vector<8x512xi32>
    %c15_i32_19 = arith.constant 15 : i32
    %117 = vector.broadcast %c15_i32_19 : i32 to vector<8x512xi32>
    %118 = arith.shrui %113, %117 : vector<8x512xi32>
    %119 = arith.ori %116, %118 : vector<8x512xi32>
    %120 = arith.xori %114, %119 : vector<8x512xi32>
    %121 = arith.addi %114, %120 : vector<8x512xi32>
    %c29_i32_20 = arith.constant 29 : i32
    %122 = vector.broadcast %c29_i32_20 : i32 to vector<8x512xi32>
    %123 = arith.shli %120, %122 : vector<8x512xi32>
    %c3_i32_21 = arith.constant 3 : i32
    %124 = vector.broadcast %c3_i32_21 : i32 to vector<8x512xi32>
    %125 = arith.shrui %120, %124 : vector<8x512xi32>
    %126 = arith.ori %123, %125 : vector<8x512xi32>
    %127 = arith.xori %121, %126 : vector<8x512xi32>
    %128 = arith.addi %121, %127 : vector<8x512xi32>
    %c16_i32_22 = arith.constant 16 : i32
    %129 = vector.broadcast %c16_i32_22 : i32 to vector<8x512xi32>
    %130 = arith.shli %127, %129 : vector<8x512xi32>
    %c16_i32_23 = arith.constant 16 : i32
    %131 = vector.broadcast %c16_i32_23 : i32 to vector<8x512xi32>
    %132 = arith.shrui %127, %131 : vector<8x512xi32>
    %133 = arith.ori %130, %132 : vector<8x512xi32>
    %134 = arith.xori %128, %133 : vector<8x512xi32>
    %135 = arith.addi %128, %134 : vector<8x512xi32>
    %c24_i32_24 = arith.constant 24 : i32
    %136 = vector.broadcast %c24_i32_24 : i32 to vector<8x512xi32>
    %137 = arith.shli %134, %136 : vector<8x512xi32>
    %c8_i32_25 = arith.constant 8 : i32
    %138 = vector.broadcast %c8_i32_25 : i32 to vector<8x512xi32>
    %139 = arith.shrui %134, %138 : vector<8x512xi32>
    %140 = arith.ori %137, %139 : vector<8x512xi32>
    %141 = arith.xori %135, %140 : vector<8x512xi32>
    %c-1640531527_i32_26 = arith.constant -1640531527 : i32
    %142 = vector.broadcast %c-1640531527_i32_26 : i32 to vector<8x512xi32>
    %143 = arith.addi %135, %142 : vector<8x512xi32>
    %144 = vector.broadcast %7 : i32 to vector<8x512xi32>
    %145 = arith.addi %141, %144 : vector<8x512xi32>
    %c4_i32 = arith.constant 4 : i32
    %146 = vector.broadcast %c4_i32 : i32 to vector<8x512xi32>
    %147 = arith.addi %145, %146 : vector<8x512xi32>
    %148 = arith.addi %143, %147 : vector<8x512xi32>
    %c13_i32_27 = arith.constant 13 : i32
    %149 = vector.broadcast %c13_i32_27 : i32 to vector<8x512xi32>
    %150 = arith.shli %147, %149 : vector<8x512xi32>
    %c19_i32_28 = arith.constant 19 : i32
    %151 = vector.broadcast %c19_i32_28 : i32 to vector<8x512xi32>
    %152 = arith.shrui %147, %151 : vector<8x512xi32>
    %153 = arith.ori %150, %152 : vector<8x512xi32>
    %154 = arith.xori %148, %153 : vector<8x512xi32>
    %155 = arith.addi %148, %154 : vector<8x512xi32>
    %c15_i32_29 = arith.constant 15 : i32
    %156 = vector.broadcast %c15_i32_29 : i32 to vector<8x512xi32>
    %157 = arith.shli %154, %156 : vector<8x512xi32>
    %c17_i32_30 = arith.constant 17 : i32
    %158 = vector.broadcast %c17_i32_30 : i32 to vector<8x512xi32>
    %159 = arith.shrui %154, %158 : vector<8x512xi32>
    %160 = arith.ori %157, %159 : vector<8x512xi32>
    %161 = arith.xori %155, %160 : vector<8x512xi32>
    %162 = arith.addi %155, %161 : vector<8x512xi32>
    %c26_i32_31 = arith.constant 26 : i32
    %163 = vector.broadcast %c26_i32_31 : i32 to vector<8x512xi32>
    %164 = arith.shli %161, %163 : vector<8x512xi32>
    %c6_i32_32 = arith.constant 6 : i32
    %165 = vector.broadcast %c6_i32_32 : i32 to vector<8x512xi32>
    %166 = arith.shrui %161, %165 : vector<8x512xi32>
    %167 = arith.ori %164, %166 : vector<8x512xi32>
    %168 = arith.xori %162, %167 : vector<8x512xi32>
    %169 = arith.addi %162, %168 : vector<8x512xi32>
    %c6_i32_33 = arith.constant 6 : i32
    %170 = vector.broadcast %c6_i32_33 : i32 to vector<8x512xi32>
    %171 = arith.shli %168, %170 : vector<8x512xi32>
    %c26_i32_34 = arith.constant 26 : i32
    %172 = vector.broadcast %c26_i32_34 : i32 to vector<8x512xi32>
    %173 = arith.shrui %168, %172 : vector<8x512xi32>
    %174 = arith.ori %171, %173 : vector<8x512xi32>
    %175 = arith.xori %169, %174 : vector<8x512xi32>
    %176 = vector.broadcast %7 : i32 to vector<8x512xi32>
    %177 = arith.addi %169, %176 : vector<8x512xi32>
    %178 = vector.broadcast %5 : i32 to vector<8x512xi32>
    %179 = arith.addi %175, %178 : vector<8x512xi32>
    %c5_i32 = arith.constant 5 : i32
    %180 = vector.broadcast %c5_i32 : i32 to vector<8x512xi32>
    %181 = arith.addi %179, %180 : vector<8x512xi32>
    %c9_i32 = arith.constant 9 : i32
    %182 = vector.broadcast %c9_i32 : i32 to vector<8x512xi32>
    %183 = arith.shrui %177, %182 : vector<8x512xi32>
    %c1065353216_i32 = arith.constant 1065353216 : i32
    %184 = vector.broadcast %c1065353216_i32 : i32 to vector<8x512xi32>
    %185 = arith.ori %183, %184 : vector<8x512xi32>
    %186 = tpu.bitcast %185 : vector<8x512xi32> -> vector<8x512xf32>
    %c9_i32_35 = arith.constant 9 : i32
    %187 = vector.broadcast %c9_i32_35 : i32 to vector<8x512xi32>
    %188 = arith.shrui %181, %187 : vector<8x512xi32>
    %c1065353216_i32_36 = arith.constant 1065353216 : i32
    %189 = vector.broadcast %c1065353216_i32_36 : i32 to vector<8x512xi32>
    %190 = arith.ori %188, %189 : vector<8x512xi32>
    %191 = tpu.bitcast %190 : vector<8x512xi32> -> vector<8x512xf32>
    %cst = arith.constant 2.000000e+00 : f32
    %192 = vector.broadcast %cst : f32 to vector<8x512xf32>
    %193 = arith.subf %192, %186 : vector<8x512xf32>
    %194 = math.log %193 : vector<8x512xf32>
    %cst_37 = arith.constant -2.000000e+00 : f32
    %195 = vector.broadcast %cst_37 : f32 to vector<8x512xf32>
    %196 = arith.mulf %195, %194 : vector<8x512xf32>
    %197 = math.sqrt %196 : vector<8x512xf32>
    %cst_38 = arith.constant 6.28318548 : f32
    %198 = vector.broadcast %cst_38 : f32 to vector<8x512xf32>
    %199 = arith.mulf %198, %191 : vector<8x512xf32>
    %200 = math.cos %199 : vector<8x512xf32>
    %201 = arith.mulf %197, %200 : vector<8x512xf32>
    %202 = math.sin %199 : vector<8x512xf32>
    %203 = arith.mulf %197, %202 : vector<8x512xf32>
    %cst_39 = arith.constant 5.000000e-02 : f32
    %204 = vector.broadcast %cst_39 : f32 to vector<8x512xf32>
    %205 = arith.mulf %204, %201 : vector<8x512xf32>
    %cst_40 = arith.constant 0.000000e+00 : f32
    %206 = vector.broadcast %cst_40 : f32 to vector<8x512xf32>
    %207 = arith.addf %206, %205 : vector<8x512xf32>
    %c0_41 = arith.constant 0 : index
    %c0_42 = arith.constant 0 : index
    %208 = vector.load %arg2[%c0_41, %c0_42] : memref<8x1024xf32, #tpu.memory_space<vmem>>, vector<8x512xf32>
    tpu.vector_store %arg2[%c0_41, %c0_42], %207 {strides = array<i32>} : memref<8x1024xf32, #tpu.memory_space<vmem>>, vector<8x512xf32>,
    %cst_43 = arith.constant 5.000000e-02 : f32
    %209 = vector.broadcast %cst_43 : f32 to vector<8x512xf32>
    %210 = arith.mulf %209, %203 : vector<8x512xf32>
    %cst_44 = arith.constant 0.000000e+00 : f32
    %211 = vector.broadcast %cst_44 : f32 to vector<8x512xf32>
    %212 = arith.addf %211, %210 : vector<8x512xf32>
    %c0_45 = arith.constant 0 : index
    %c512 = arith.constant 512 : index
    %213 = vector.load %arg2[%c0_45, %c512] : memref<8x1024xf32, #tpu.memory_space<vmem>>, vector<8x512xf32>
    tpu.vector_store %arg2[%c0_45, %c512], %212 {strides = array<i32>} : memref<8x1024xf32, #tpu.memory_space<vmem>>, vector<8x512xf32>,
    return
  }
  func.func @transform_0(%arg0: i32, %arg1: memref<1xi32, #tpu.memory_space<smem>>) -> (i32, i32) {
    %c0_i32 = arith.constant 0 : i32
    %c0_i32_0 = arith.constant 0 : i32
    return %arg0, %c0_i32 : i32, i32
  }
}

</mosaic_0001>

<bundles_post_ra>
// kernel: tpu_custom_call.1
= control target key start
LH: loop header
LB: loop body
LE: loop exit
PB: predicated region body
PF: predicated region fallthrough
CT: control target
= control target key end

     0   :  { %7 = vsyncpa [#allocation5], 0  ;;  %v8_v0 = vlaneseq  ;;  %s1983_s0 = inlined_call_operand.<no memory space> [shape: s32[1], index: 0, kind: input, shape index: {}]   ;;  %s1984_s1 = inlined_call_operand.hbm [shape: f32[8,1024], index: 1, kind: output, shape index: {}]  }
   0x1   :  { %v1565_v1 = vstv %s1983_s0  ;;  %s19_s10 = sxor.u32 2654435769, %s1983_s0  ;;  %s1551_s0 = smov [#allocation4]  }
   0x2   :  { %v9_v2 = vshrl.u32 %v8_v0, 7  ;;  %v14_v3 = vand.u32 127, %v8_v0  ;;  %s20_s11 = sxor.u32 466688986, %s19_s10  ;;  %s1426_s12 = sshll.u32 %s1551_s0, 4  ;;  %s1427_s12 = int_to_ptr.vmem [resolvable:$true] %s1426_s12 }
   0x3   :  { %s1521_s13 = scalar_lea.vmem %s1427_s12, 1024  ;;  %p1526_p1 = scmp.lt.s32.totalorder %s1427_s12, %s1427_s12 }
   0x4   :  { %v15_v4 = vadd.s32 128, %v14_v3  ;;  %v16_v5 = vadd.s32 256, %v14_v3  ;;  %v17_v6 = vadd.s32 384, %v14_v3  ;;  %v22_v7 = vadd.s32 %v1565_v1, %v9_v2  ;;  %p1522_p0 = scmp.ne.s32.totalorder %s1427_s12, %s1521_s13  ;;  %p1527_p2 = scmp.lt.s32.totalorder %s1521_s13, %s1521_s13 }
   0x5   :  { %v23_v8 = vadd.s32 2654435769, %v14_v3 }
   0x6   :  { %v24_v9 = vadd.s32 2654435769, %v15_v4  ;;  %v25_v10 = vadd.s32 2654435769, %v16_v5  ;;  %v26_v11 = vadd.s32 2654435769, %v17_v6  ;;  %p1528_p3 = por %p1527_p2, %p1526_p1 }
   0x7   :  { %v31_v12 = vshll.u32 %v23_v8, 13  ;;  %v35_v13 = vshrl.u32 %v23_v8, 19  ;;  %v27_v14 = vadd.s32 %v23_v8, %v22_v7 }
   0x8   :  { %v28_v15 = vadd.s32 %v24_v9, %v22_v7  ;;  %v29_v16 = vadd.s32 %v25_v10, %v22_v7  ;;  %v32_v17 = vshll.u32 %v24_v9, 13  ;;  %v33_v18 = vshll.u32 %v25_v10, 13  ;;  %p1529_p4 = pnand %p1528_p3, %p1522_p0 }
   0x9   :  { %v34_v19 = vshll.u32 %v26_v11, 13  ;;  %v36_v20 = vshrl.u32 %v24_v9, 19  ;;  %v37_v21 = vshrl.u32 %v25_v10, 19  ;;  %v30_v22 = vadd.s32 %v26_v11, %v22_v7 }
   0xa   :  { %v38_v23 = vshrl.u32 %v26_v11, 19  ;;  %v39_v24 = vor.u32 %v35_v13, %v31_v12 }
   0xb   :  { %v40_v25 = vor.u32 %v36_v20, %v32_v17  ;;  %v41_v26 = vor.u32 %v37_v21, %v33_v18 }
   0xc   :  { %v42_v27 = vor.u32 %v38_v23, %v34_v19  ;;  %v43_v28 = vxor.u32 %v39_v24, %v27_v14  ;;  %v1571_v24 = vstv %s20_s11 }
   0xd   :  { %v44_v29 = vxor.u32 %v40_v25, %v28_v15  ;;  %v45_v30 = vxor.u32 %v41_v26, %v29_v16 }
   0xe   :  { %v46_v31 = vxor.u32 %v42_v27, %v30_v22  ;;  %v51_v32 = vshll.u32 %v43_v28, 15  ;;  %v55_v33 = vshrl.u32 %v43_v28, 17  ;;  %v47_v34 = vadd.s32 %v43_v28, %v27_v14 }
   0xf   :  { %v48_v35 = vadd.s32 %v44_v29, %v28_v15  ;;  %v52_v36 = vshll.u32 %v44_v29, 15  ;;  %v53_v37 = vshll.u32 %v45_v30, 15  ;;  %v49_v38 = vadd.s32 %v45_v30, %v29_v16 }
  0x10   :  { %v54_v39 = vshll.u32 %v46_v31, 15  ;;  %v56_v40 = vshrl.u32 %v44_v29, 17  ;;  %v57_v41 = vshrl.u32 %v45_v30, 17  ;;  %v50_v42 = vadd.s32 %v46_v31, %v30_v22 }
  0x11   :  { %v58_v43 = vshrl.u32 %v46_v31, 17  ;;  %v59_v44 = vor.u32 %v55_v33, %v51_v32 }
  0x12   :  { %v60_v45 = vor.u32 %v56_v40, %v52_v36  ;;  %v61_v46 = vor.u32 %v57_v41, %v53_v37 }
  0x13   :  { %v62_v47 = vor.u32 %v58_v43, %v54_v39  ;;  %v63_v48 = vxor.u32 %v59_v44, %v47_v34 }
  0x14   :  { %v64_v49 = vxor.u32 %v60_v45, %v48_v35  ;;  %v65_v50 = vxor.u32 %v61_v46, %v49_v38 }
  0x15   :  { %v66_v51 = vxor.u32 %v62_v47, %v50_v42  ;;  %v71_v52 = vshll.u32 %v63_v48, 26  ;;  %v75_v53 = vshrl.u32 %v63_v48, 6  ;;  %v67_v54 = vadd.s32 %v63_v48, %v47_v34 }
  0x16   :  { %v68_v55 = vadd.s32 %v64_v49, %v48_v35  ;;  %v72_v56 = vshll.u32 %v64_v49, 26  ;;  %v73_v57 = vshll.u32 %v65_v50, 26  ;;  %v69_v58 = vadd.s32 %v65_v50, %v49_v38 }
  0x17   :  { %v74_v59 = vshll.u32 %v66_v51, 26  ;;  %v76_v60 = vshrl.u32 %v64_v49, 6  ;;  %v77_v61 = vshrl.u32 %v65_v50, 6  ;;  %v70_v62 = vadd.s32 %v66_v51, %v50_v42 }
  0x18   :  { %v78_v63 = vshrl.u32 %v66_v51, 6  ;;  %v79_v0 = vor.u32 %v75_v53, %v71_v52 }
  0x19   :  { %v80_v2 = vor.u32 %v76_v60, %v72_v56  ;;  %v81_v3 = vor.u32 %v77_v61, %v73_v57 }
  0x1a   :  { %v82_v4 = vor.u32 %v78_v63, %v74_v59  ;;  %v83_v5 = vxor.u32 %v79_v0, %v67_v54 }
  0x1b   :  { %v84_v6 = vxor.u32 %v80_v2, %v68_v55  ;;  %v85_v7 = vxor.u32 %v81_v3, %v69_v58 }
  0x1c   :  { %v86_v8 = vxor.u32 %v82_v4, %v70_v62  ;;  %v91_v9 = vshll.u32 %v83_v5, 6  ;;  %v95_v10 = vshrl.u32 %v83_v5, 26  ;;  %v87_v11 = vadd.s32 %v83_v5, %v67_v54 }
  0x1d   :  { %v88_v12 = vadd.s32 %v84_v6, %v68_v55  ;;  %v92_v13 = vshll.u32 %v84_v6, 6  ;;  %v93_v14 = vshll.u32 %v85_v7, 6  ;;  %v89_v15 = vadd.s32 %v85_v7, %v69_v58 }
  0x1e   :  { %v94_v16 = vshll.u32 %v86_v8, 6  ;;  %v96_v17 = vshrl.u32 %v84_v6, 26  ;;  %v97_v18 = vshrl.u32 %v85_v7, 26  ;;  %v90_v19 = vadd.s32 %v86_v8, %v70_v62 }
  0x1f   :  { %v98_v20 = vshrl.u32 %v86_v8, 26  ;;  %v99_v21 = vor.u32 %v95_v10, %v91_v9  ;;  %v107_v31 = vadd.s32 2654435769, %v87_v11  ;;  %v108_v32 = vadd.s32 2654435769, %v88_v12 }
  0x20   :  { %v100_v22 = vor.u32 %v96_v17, %v92_v13  ;;  %v101_v23 = vor.u32 %v97_v18, %v93_v14  ;;  %v109_v35 = vadd.s32 2654435769, %v89_v15  ;;  %v110_v38 = vadd.s32 2654435769, %v90_v19 }
  0x21   :  { %v102_v25 = vor.u32 %v98_v20, %v94_v16  ;;  %v103_v26 = vxor.u32 %v99_v21, %v87_v11 }
  0x22   :  { %v104_v27 = vxor.u32 %v100_v22, %v88_v12  ;;  %v105_v28 = vxor.u32 %v101_v23, %v89_v15 }
  0x23   :  { %v106_v29 = vxor.u32 %v102_v25, %v90_v19  ;;  %v112_v30 = vadd.s32 %v1571_v24, %v103_v26 }
  0x24   :  { %v113_v33 = vadd.s32 %v1571_v24, %v104_v27  ;;  %v114_v34 = vadd.s32 %v1571_v24, %v105_v28 }
  0x25   :  { %v115_v36 = vadd.s32 %v1571_v24, %v106_v29  ;;  %v116_v37 = vadd.s32 1, %v112_v30 }
  0x26   :  { %v117_v39 = vadd.s32 1, %v113_v33  ;;  %v118_v40 = vadd.s32 1, %v114_v34 }
  0x27   :  { %v119_v41 = vadd.s32 1, %v115_v36  ;;  %v124_v42 = vshll.u32 %v116_v37, 17  ;;  %v128_v43 = vshrl.u32 %v116_v37, 15  ;;  %v120_v44 = vadd.s32 %v116_v37, %v107_v31 }
  0x28   :  { %v121_v45 = vadd.s32 %v117_v39, %v108_v32  ;;  %v125_v46 = vshll.u32 %v117_v39, 17  ;;  %v126_v47 = vshll.u32 %v118_v40, 17  ;;  %v122_v48 = vadd.s32 %v118_v40, %v109_v35 }
  0x29   :  { %v127_v49 = vshll.u32 %v119_v41, 17  ;;  %v129_v50 = vshrl.u32 %v117_v39, 15  ;;  %v130_v51 = vshrl.u32 %v118_v40, 15  ;;  %v123_v52 = vadd.s32 %v119_v41, %v110_v38 }
  0x2a   :  { %v131_v53 = vshrl.u32 %v119_v41, 15  ;;  %v132_v54 = vor.u32 %v128_v43, %v124_v42 }
  0x2b   :  { %v133_v55 = vor.u32 %v129_v50, %v125_v46  ;;  %v134_v56 = vor.u32 %v130_v51, %v126_v47 }
  0x2c   :  { %v135_v57 = vor.u32 %v131_v53, %v127_v49  ;;  %v136_v58 = vxor.u32 %v132_v54, %v120_v44 }
  0x2d   :  { %v137_v59 = vxor.u32 %v133_v55, %v121_v45  ;;  %v138_v60 = vxor.u32 %v134_v56, %v122_v48 }
  0x2e   :  { %v139_v61 = vxor.u32 %v135_v57, %v123_v52  ;;  %v144_v62 = vshll.u32 %v136_v58, 29  ;;  %v148_v63 = vshrl.u32 %v136_v58, 3  ;;  %v140_v0 = vadd.s32 %v136_v58, %v120_v44 }
  0x2f   :  { %v141_v2 = vadd.s32 %v137_v59, %v121_v45  ;;  %v145_v3 = vshll.u32 %v137_v59, 29  ;;  %v146_v4 = vshll.u32 %v138_v60, 29  ;;  %v142_v5 = vadd.s32 %v138_v60, %v122_v48 }
  0x30   :  { %v147_v6 = vshll.u32 %v139_v61, 29  ;;  %v149_v7 = vshrl.u32 %v137_v59, 3  ;;  %v150_v8 = vshrl.u32 %v138_v60, 3  ;;  %v143_v9 = vadd.s32 %v139_v61, %v123_v52 }
  0x31   :  { %v151_v10 = vshrl.u32 %v139_v61, 3  ;;  %v152_v11 = vor.u32 %v148_v63, %v144_v62 }
  0x32   :  { %v153_v12 = vor.u32 %v149_v7, %v145_v3  ;;  %v154_v13 = vor.u32 %v150_v8, %v146_v4 }
  0x33   :  { %v155_v14 = vor.u32 %v151_v10, %v147_v6  ;;  %v156_v15 = vxor.u32 %v152_v11, %v140_v0 }
  0x34   :  { %v157_v16 = vxor.u32 %v153_v12, %v141_v2  ;;  %v158_v17 = vxor.u32 %v154_v13, %v142_v5 }
  0x35   :  { %v159_v18 = vxor.u32 %v155_v14, %v143_v9  ;;  %v164_v19 = vshll.u32 %v156_v15, 16  ;;  %v168_v20 = vshrl.u32 %v156_v15, 16  ;;  %v160_v21 = vadd.s32 %v156_v15, %v140_v0 }
  0x36   :  { %v161_v22 = vadd.s32 %v157_v16, %v141_v2  ;;  %v165_v23 = vshll.u32 %v157_v16, 16  ;;  %v166_v25 = vshll.u32 %v158_v17, 16  ;;  %v162_v26 = vadd.s32 %v158_v17, %v142_v5 }
  0x37   :  { %v167_v27 = vshll.u32 %v159_v18, 16  ;;  %v169_v28 = vshrl.u32 %v157_v16, 16  ;;  %v170_v29 = vshrl.u32 %v158_v17, 16  ;;  %v163_v30 = vadd.s32 %v159_v18, %v143_v9 }
  0x38   :  { %v171_v31 = vshrl.u32 %v159_v18, 16  ;;  %v172_v32 = vor.u32 %v168_v20, %v164_v19 }
  0x39   :  { %v173_v33 = vor.u32 %v169_v28, %v165_v23  ;;  %v174_v34 = vor.u32 %v170_v29, %v166_v25 }
  0x3a   :  { %v175_v35 = vor.u32 %v171_v31, %v167_v27  ;;  %v176_v36 = vxor.u32 %v172_v32, %v160_v21 }
  0x3b   :  { %v177_v37 = vxor.u32 %v173_v33, %v161_v22  ;;  %v178_v38 = vxor.u32 %v174_v34, %v162_v26 }
  0x3c   :  { %v179_v39 = vxor.u32 %v175_v35, %v163_v30  ;;  %v184_v40 = vshll.u32 %v176_v36, 24  ;;  %v188_v41 = vshrl.u32 %v176_v36, 8  ;;  %v180_v42 = vadd.s32 %v176_v36, %v160_v21 }
  0x3d   :  { %v181_v43 = vadd.s32 %v177_v37, %v161_v22  ;;  %v185_v44 = vshll.u32 %v177_v37, 24  ;;  %v186_v45 = vshll.u32 %v178_v38, 24  ;;  %v182_v46 = vadd.s32 %v178_v38, %v162_v26 }
  0x3e   :  { %v187_v47 = vshll.u32 %v179_v39, 24  ;;  %v189_v48 = vshrl.u32 %v177_v37, 8  ;;  %v190_v49 = vshrl.u32 %v178_v38, 8  ;;  %v183_v50 = vadd.s32 %v179_v39, %v163_v30 }
  0x3f   :  { %v191_v51 = vshrl.u32 %v179_v39, 8  ;;  %v192_v52 = vor.u32 %v188_v41, %v184_v40  ;;  %v200_v61 = vadd.s32 %v180_v42, %v1571_v24  ;;  %v201_v62 = vadd.s32 %v181_v43, %v1571_v24 }
  0x40   :  { %v193_v53 = vor.u32 %v189_v48, %v185_v44  ;;  %v194_v54 = vor.u32 %v190_v49, %v186_v45  ;;  %v202_v2 = vadd.s32 %v182_v46, %v1571_v24  ;;  %v203_v5 = vadd.s32 %v183_v50, %v1571_v24 }
  0x41   :  { %v195_v55 = vor.u32 %v191_v51, %v187_v47  ;;  %v196_v56 = vxor.u32 %v192_v52, %v180_v42 }
  0x42   :  { %v197_v57 = vxor.u32 %v193_v53, %v181_v43  ;;  %v198_v58 = vxor.u32 %v194_v54, %v182_v46 }
  0x43   :  { %v199_v59 = vxor.u32 %v195_v55, %v183_v50  ;;  %v204_v60 = vadd.s32 %v196_v56, %v1565_v1 }
  0x44   :  { %v205_v63 = vadd.s32 %v197_v57, %v1565_v1  ;;  %v206_v0 = vadd.s32 %v198_v58, %v1565_v1 }
  0x45   :  { %v207_v3 = vadd.s32 %v199_v59, %v1565_v1  ;;  %v208_v4 = vadd.s32 2, %v204_v60 }
  0x46   :  { %v209_v6 = vadd.s32 2, %v205_v63  ;;  %v210_v7 = vadd.s32 2, %v206_v0 }
  0x47   :  { %v211_v8 = vadd.s32 2, %v207_v3  ;;  %v216_v9 = vshll.u32 %v208_v4, 13  ;;  %v220_v10 = vshrl.u32 %v208_v4, 19  ;;  %v212_v11 = vadd.s32 %v208_v4, %v200_v61 }
  0x48   :  { %v213_v12 = vadd.s32 %v209_v6, %v201_v62  ;;  %v217_v13 = vshll.u32 %v209_v6, 13  ;;  %v218_v14 = vshll.u32 %v210_v7, 13  ;;  %v214_v15 = vadd.s32 %v210_v7, %v202_v2 }
  0x49   :  { %v219_v16 = vshll.u32 %v211_v8, 13  ;;  %v221_v17 = vshrl.u32 %v209_v6, 19  ;;  %v222_v18 = vshrl.u32 %v210_v7, 19  ;;  %v215_v19 = vadd.s32 %v211_v8, %v203_v5 }
  0x4a   :  { %v223_v20 = vshrl.u32 %v211_v8, 19  ;;  %v224_v21 = vor.u32 %v220_v10, %v216_v9 }
  0x4b   :  { %v225_v22 = vor.u32 %v221_v17, %v217_v13  ;;  %v226_v23 = vor.u32 %v222_v18, %v218_v14 }
  0x4c   :  { %v227_v25 = vor.u32 %v223_v20, %v219_v16  ;;  %v228_v26 = vxor.u32 %v224_v21, %v212_v11 }
  0x4d   :  { %v229_v27 = vxor.u32 %v225_v22, %v213_v12  ;;  %v230_v28 = vxor.u32 %v226_v23, %v214_v15 }
  0x4e   :  { %v231_v29 = vxor.u32 %v227_v25, %v215_v19  ;;  %v236_v30 = vshll.u32 %v228_v26, 15  ;;  %v240_v31 = vshrl.u32 %v228_v26, 17  ;;  %v232_v32 = vadd.s32 %v228_v26, %v212_v11 }
  0x4f   :  { %v233_v33 = vadd.s32 %v229_v27, %v213_v12  ;;  %v237_v34 = vshll.u32 %v229_v27, 15  ;;  %v238_v35 = vshll.u32 %v230_v28, 15  ;;  %v234_v36 = vadd.s32 %v230_v28, %v214_v15 }
  0x50   :  { %v239_v37 = vshll.u32 %v231_v29, 15  ;;  %v241_v38 = vshrl.u32 %v229_v27, 17  ;;  %v242_v39 = vshrl.u32 %v230_v28, 17  ;;  %v235_v40 = vadd.s32 %v231_v29, %v215_v19 }
  0x51   :  { %v243_v41 = vshrl.u32 %v231_v29, 17  ;;  %v244_v42 = vor.u32 %v240_v31, %v236_v30 }
  0x52   :  { %v245_v43 = vor.u32 %v241_v38, %v237_v34  ;;  %v246_v44 = vor.u32 %v242_v39, %v238_v35 }
  0x53   :  { %v247_v45 = vor.u32 %v243_v41, %v239_v37  ;;  %v248_v46 = vxor.u32 %v244_v42, %v232_v32 }
  0x54   :  { %v249_v47 = vxor.u32 %v245_v43, %v233_v33  ;;  %v250_v48 = vxor.u32 %v246_v44, %v234_v36 }
  0x55   :  { %v251_v49 = vxor.u32 %v247_v45, %v235_v40  ;;  %v256_v50 = vshll.u32 %v248_v46, 26  ;;  %v260_v51 = vshrl.u32 %v248_v46, 6  ;;  %v252_v52 = vadd.s32 %v248_v46, %v232_v32 }
  0x56   :  { %v253_v53 = vadd.s32 %v249_v47, %v233_v33  ;;  %v257_v54 = vshll.u32 %v249_v47, 26  ;;  %v258_v55 = vshll.u32 %v250_v48, 26  ;;  %v254_v56 = vadd.s32 %v250_v48, %v234_v36 }
  0x57   :  { %v259_v57 = vshll.u32 %v251_v49, 26  ;;  %v261_v58 = vshrl.u32 %v249_v47, 6  ;;  %v262_v59 = vshrl.u32 %v250_v48, 6  ;;  %v255_v60 = vadd.s32 %v251_v49, %v235_v40 }
  0x58   :  { %v263_v61 = vshrl.u32 %v251_v49, 6  ;;  %v264_v62 = vor.u32 %v260_v51, %v256_v50 }
  0x59   :  { %v265_v63 = vor.u32 %v261_v58, %v257_v54  ;;  %v266_v0 = vor.u32 %v262_v59, %v258_v55 }
  0x5a   :  { %v267_v2 = vor.u32 %v263_v61, %v259_v57  ;;  %v268_v3 = vxor.u32 %v264_v62, %v252_v52 }
  0x5b   :  { %v269_v4 = vxor.u32 %v265_v63, %v253_v53  ;;  %v270_v5 = vxor.u32 %v266_v0, %v254_v56 }
  0x5c   :  { %v271_v6 = vxor.u32 %v267_v2, %v255_v60  ;;  %v276_v7 = vshll.u32 %v268_v3, 6  ;;  %v280_v8 = vshrl.u32 %v268_v3, 26  ;;  %v272_v9 = vadd.s32 %v268_v3, %v252_v52 }
  0x5d   :  { %v273_v10 = vadd.s32 %v269_v4, %v253_v53  ;;  %v277_v11 = vshll.u32 %v269_v4, 6  ;;  %v278_v12 = vshll.u32 %v270_v5, 6  ;;  %v274_v13 = vadd.s32 %v270_v5, %v254_v56 }
  0x5e   :  { %v279_v14 = vshll.u32 %v271_v6, 6  ;;  %v281_v15 = vshrl.u32 %v269_v4, 26  ;;  %v282_v16 = vshrl.u32 %v270_v5, 26  ;;  %v275_v17 = vadd.s32 %v271_v6, %v255_v60 }
  0x5f   :  { %v283_v18 = vshrl.u32 %v271_v6, 26  ;;  %v284_v19 = vor.u32 %v280_v8, %v276_v7  ;;  %v292_v29 = vadd.s32 %v272_v9, %v1565_v1  ;;  %v293_v30 = vadd.s32 %v273_v10, %v1565_v1 }
  0x60   :  { %v285_v20 = vor.u32 %v281_v15, %v277_v11  ;;  %v286_v21 = vor.u32 %v282_v16, %v278_v12  ;;  %v294_v33 = vadd.s32 %v274_v13, %v1565_v1  ;;  %v295_v36 = vadd.s32 %v275_v17, %v1565_v1 }
  0x61   :  { %v287_v22 = vor.u32 %v283_v18, %v279_v14  ;;  %v288_v23 = vxor.u32 %v284_v19, %v272_v9 }
  0x62   :  { %v289_v25 = vxor.u32 %v285_v20, %v273_v10  ;;  %v290_v26 = vxor.u32 %v286_v21, %v274_v13 }
  0x63   :  { %v291_v27 = vxor.u32 %v287_v22, %v275_v17  ;;  %v296_v28 = vadd.s32 2654435769, %v288_v23 }
  0x64   :  { %v297_v31 = vadd.s32 2654435769, %v289_v25  ;;  %v298_v32 = vadd.s32 2654435769, %v290_v26 }
  0x65   :  { %v299_v34 = vadd.s32 2654435769, %v291_v27  ;;  %v300_v35 = vadd.s32 3, %v296_v28 }
  0x66   :  { %v301_v37 = vadd.s32 3, %v297_v31  ;;  %v302_v38 = vadd.s32 3, %v298_v32 }
  0x67   :  { %v303_v39 = vadd.s32 3, %v299_v34  ;;  %v308_v40 = vshll.u32 %v300_v35, 17  ;;  %v312_v41 = vshrl.u32 %v300_v35, 15  ;;  %v304_v42 = vadd.s32 %v300_v35, %v292_v29 }
  0x68   :  { %v305_v43 = vadd.s32 %v301_v37, %v293_v30  ;;  %v309_v44 = vshll.u32 %v301_v37, 17  ;;  %v310_v45 = vshll.u32 %v302_v38, 17  ;;  %v306_v46 = vadd.s32 %v302_v38, %v294_v33 }
  0x69   :  { %v311_v47 = vshll.u32 %v303_v39, 17  ;;  %v313_v48 = vshrl.u32 %v301_v37, 15  ;;  %v314_v49 = vshrl.u32 %v302_v38, 15  ;;  %v307_v50 = vadd.s32 %v303_v39, %v295_v36 }
  0x6a   :  { %v315_v51 = vshrl.u32 %v303_v39, 15  ;;  %v316_v52 = vor.u32 %v312_v41, %v308_v40 }
  0x6b   :  { %v317_v53 = vor.u32 %v313_v48, %v309_v44  ;;  %v318_v54 = vor.u32 %v314_v49, %v310_v45 }
  0x6c   :  { %v319_v55 = vor.u32 %v315_v51, %v311_v47  ;;  %v320_v56 = vxor.u32 %v316_v52, %v304_v42 }
  0x6d   :  { %v321_v57 = vxor.u32 %v317_v53, %v305_v43  ;;  %v322_v58 = vxor.u32 %v318_v54, %v306_v46 }
  0x6e   :  { %v323_v59 = vxor.u32 %v319_v55, %v307_v50  ;;  %v328_v60 = vshll.u32 %v320_v56, 29  ;;  %v332_v61 = vshrl.u32 %v320_v56, 3  ;;  %v324_v62 = vadd.s32 %v320_v56, %v304_v42 }
  0x6f   :  { %v325_v63 = vadd.s32 %v321_v57, %v305_v43  ;;  %v329_v0 = vshll.u32 %v321_v57, 29  ;;  %v330_v2 = vshll.u32 %v322_v58, 29  ;;  %v326_v3 = vadd.s32 %v322_v58, %v306_v46 }
  0x70   :  { %v331_v4 = vshll.u32 %v323_v59, 29  ;;  %v333_v5 = vshrl.u32 %v321_v57, 3  ;;  %v334_v6 = vshrl.u32 %v322_v58, 3  ;;  %v327_v7 = vadd.s32 %v323_v59, %v307_v50 }
  0x71   :  { %v335_v8 = vshrl.u32 %v323_v59, 3  ;;  %v336_v9 = vor.u32 %v332_v61, %v328_v60 }
  0x72   :  { %v337_v10 = vor.u32 %v333_v5, %v329_v0  ;;  %v338_v11 = vor.u32 %v334_v6, %v330_v2 }
  0x73   :  { %v339_v12 = vor.u32 %v335_v8, %v331_v4  ;;  %v340_v13 = vxor.u32 %v336_v9, %v324_v62 }
  0x74   :  { %v341_v14 = vxor.u32 %v337_v10, %v325_v63  ;;  %v342_v15 = vxor.u32 %v338_v11, %v326_v3 }
  0x75   :  { %v343_v16 = vxor.u32 %v339_v12, %v327_v7  ;;  %v348_v17 = vshll.u32 %v340_v13, 16  ;;  %v352_v18 = vshrl.u32 %v340_v13, 16  ;;  %v344_v19 = vadd.s32 %v340_v13, %v324_v62 }
  0x76   :  { %v345_v20 = vadd.s32 %v341_v14, %v325_v63  ;;  %v349_v21 = vshll.u32 %v341_v14, 16  ;;  %v350_v22 = vshll.u32 %v342_v15, 16  ;;  %v346_v23 = vadd.s32 %v342_v15, %v326_v3 }
  0x77   :  { %v351_v25 = vshll.u32 %v343_v16, 16  ;;  %v353_v26 = vshrl.u32 %v341_v14, 16  ;;  %v354_v27 = vshrl.u32 %v342_v15, 16  ;;  %v347_v28 = vadd.s32 %v343_v16, %v327_v7 }
  0x78   :  { %v355_v29 = vshrl.u32 %v343_v16, 16  ;;  %v356_v30 = vor.u32 %v352_v18, %v348_v17 }
  0x79   :  { %v357_v31 = vor.u32 %v353_v26, %v349_v21  ;;  %v358_v32 = vor.u32 %v354_v27, %v350_v22 }
  0x7a   :  { %v359_v33 = vor.u32 %v355_v29, %v351_v25  ;;  %v360_v34 = vxor.u32 %v356_v30, %v344_v19 }
  0x7b   :  { %v361_v35 = vxor.u32 %v357_v31, %v345_v20  ;;  %v362_v36 = vxor.u32 %v358_v32, %v346_v23 }
  0x7c   :  { %v363_v37 = vxor.u32 %v359_v33, %v347_v28  ;;  %v368_v38 = vshll.u32 %v360_v34, 24  ;;  %v372_v39 = vshrl.u32 %v360_v34, 8  ;;  %v364_v40 = vadd.s32 %v360_v34, %v344_v19 }
  0x7d   :  { %v365_v41 = vadd.s32 %v361_v35, %v345_v20  ;;  %v369_v42 = vshll.u32 %v361_v35, 24  ;;  %v370_v43 = vshll.u32 %v362_v36, 24  ;;  %v366_v44 = vadd.s32 %v362_v36, %v346_v23 }
  0x7e   :  { %v371_v45 = vshll.u32 %v363_v37, 24  ;;  %v373_v46 = vshrl.u32 %v361_v35, 8  ;;  %v374_v47 = vshrl.u32 %v362_v36, 8  ;;  %v367_v48 = vadd.s32 %v363_v37, %v347_v28 }
  0x7f   :  { %v375_v49 = vshrl.u32 %v363_v37, 8  ;;  %v376_v50 = vor.u32 %v372_v39, %v368_v38  ;;  %v384_v59 = vadd.s32 2654435769, %v364_v40  ;;  %v385_v60 = vadd.s32 2654435769, %v365_v41 }
  0x80   :  { %v377_v51 = vor.u32 %v373_v46, %v369_v42  ;;  %v378_v52 = vor.u32 %v374_v47, %v370_v43  ;;  %v386_v63 = vadd.s32 2654435769, %v366_v44  ;;  %v387_v3 = vadd.s32 2654435769, %v367_v48 }
  0x81   :  { %v379_v53 = vor.u32 %v375_v49, %v371_v45  ;;  %v380_v54 = vxor.u32 %v376_v50, %v364_v40 }
  0x82   :  { %v381_v55 = vxor.u32 %v377_v51, %v365_v41  ;;  %v382_v56 = vxor.u32 %v378_v52, %v366_v44 }
  0x83   :  { %v383_v57 = vxor.u32 %v379_v53, %v367_v48  ;;  %v388_v58 = vadd.s32 %v380_v54, %v1571_v24 }
  0x84   :  { %v389_v61 = vadd.s32 %v381_v55, %v1571_v24  ;;  %v390_v62 = vadd.s32 %v382_v56, %v1571_v24 }
  0x85   :  { %v391_v0 = vadd.s32 %v383_v57, %v1571_v24  ;;  %v392_v2 = vadd.s32 4, %v388_v58 }
  0x86   :  { %v393_v4 = vadd.s32 4, %v389_v61  ;;  %v394_v5 = vadd.s32 4, %v390_v62 }
  0x87   :  { %v395_v6 = vadd.s32 4, %v391_v0  ;;  %v400_v7 = vshll.u32 %v392_v2, 13  ;;  %v404_v8 = vshrl.u32 %v392_v2, 19  ;;  %v396_v9 = vadd.s32 %v392_v2, %v384_v59 }
  0x88   :  { %v397_v10 = vadd.s32 %v393_v4, %v385_v60  ;;  %v401_v11 = vshll.u32 %v393_v4, 13  ;;  %v402_v12 = vshll.u32 %v394_v5, 13  ;;  %v398_v13 = vadd.s32 %v394_v5, %v386_v63 }
  0x89   :  { %v403_v14 = vshll.u32 %v395_v6, 13  ;;  %v405_v15 = vshrl.u32 %v393_v4, 19  ;;  %v406_v16 = vshrl.u32 %v394_v5, 19  ;;  %v399_v17 = vadd.s32 %v395_v6, %v387_v3 }
  0x8a   :  { %v407_v18 = vshrl.u32 %v395_v6, 19  ;;  %v408_v19 = vor.u32 %v404_v8, %v400_v7 }
  0x8b   :  { %v409_v20 = vor.u32 %v405_v15, %v401_v11  ;;  %v410_v21 = vor.u32 %v406_v16, %v402_v12 }
  0x8c   :  { %v411_v22 = vor.u32 %v407_v18, %v403_v14  ;;  %v412_v23 = vxor.u32 %v408_v19, %v396_v9 }
  0x8d   :  { %v413_v25 = vxor.u32 %v409_v20, %v397_v10  ;;  %v414_v26 = vxor.u32 %v410_v21, %v398_v13 }
  0x8e   :  { %v415_v27 = vxor.u32 %v411_v22, %v399_v17  ;;  %v420_v28 = vshll.u32 %v412_v23, 15  ;;  %v424_v29 = vshrl.u32 %v412_v23, 17  ;;  %v416_v30 = vadd.s32 %v412_v23, %v396_v9 }
  0x8f   :  { %v417_v31 = vadd.s32 %v413_v25, %v397_v10  ;;  %v421_v32 = vshll.u32 %v413_v25, 15  ;;  %v422_v33 = vshll.u32 %v414_v26, 15  ;;  %v418_v34 = vadd.s32 %v414_v26, %v398_v13 }
  0x90   :  { %v423_v35 = vshll.u32 %v415_v27, 15  ;;  %v425_v36 = vshrl.u32 %v413_v25, 17  ;;  %v426_v37 = vshrl.u32 %v414_v26, 17  ;;  %v419_v38 = vadd.s32 %v415_v27, %v399_v17 }
  0x91   :  { %v427_v39 = vshrl.u32 %v415_v27, 17  ;;  %v428_v40 = vor.u32 %v424_v29, %v420_v28 }
  0x92   :  { %v429_v41 = vor.u32 %v425_v36, %v421_v32  ;;  %v430_v42 = vor.u32 %v426_v37, %v422_v33 }
  0x93   :  { %v431_v43 = vor.u32 %v427_v39, %v423_v35  ;;  %v432_v44 = vxor.u32 %v428_v40, %v416_v30 }
  0x94   :  { %v433_v45 = vxor.u32 %v429_v41, %v417_v31  ;;  %v434_v46 = vxor.u32 %v430_v42, %v418_v34 }
  0x95   :  { %v435_v47 = vxor.u32 %v431_v43, %v419_v38  ;;  %v440_v48 = vshll.u32 %v432_v44, 26  ;;  %v444_v49 = vshrl.u32 %v432_v44, 6  ;;  %v436_v50 = vadd.s32 %v432_v44, %v416_v30 }
  0x96   :  { %v437_v51 = vadd.s32 %v433_v45, %v417_v31  ;;  %v441_v52 = vshll.u32 %v433_v45, 26  ;;  %v442_v53 = vshll.u32 %v434_v46, 26  ;;  %v438_v54 = vadd.s32 %v434_v46, %v418_v34 }
  0x97   :  { %v443_v55 = vshll.u32 %v435_v47, 26  ;;  %v445_v56 = vshrl.u32 %v433_v45, 6  ;;  %v446_v57 = vshrl.u32 %v434_v46, 6  ;;  %v439_v58 = vadd.s32 %v435_v47, %v419_v38 }
  0x98   :  { %v447_v59 = vshrl.u32 %v435_v47, 6  ;;  %v448_v60 = vor.u32 %v444_v49, %v440_v48 }
  0x99   :  { %v449_v61 = vor.u32 %v445_v56, %v441_v52  ;;  %v450_v62 = vor.u32 %v446_v57, %v442_v53 }
  0x9a   :  { %v451_v63 = vor.u32 %v447_v59, %v443_v55  ;;  %v452_v0 = vxor.u32 %v448_v60, %v436_v50 }
  0x9b   :  { %v453_v2 = vxor.u32 %v449_v61, %v437_v51  ;;  %v454_v3 = vxor.u32 %v450_v62, %v438_v54 }
  0x9c   :  { %v455_v4 = vxor.u32 %v451_v63, %v439_v58  ;;  %v460_v5 = vshll.u32 %v452_v0, 6  ;;  %v464_v6 = vshrl.u32 %v452_v0, 26  ;;  %v456_v7 = vadd.s32 %v452_v0, %v436_v50 }
  0x9d   :  { %v457_v8 = vadd.s32 %v453_v2, %v437_v51  ;;  %v461_v9 = vshll.u32 %v453_v2, 6  ;;  %v462_v10 = vshll.u32 %v454_v3, 6  ;;  %v465_v12 = vshrl.u32 %v453_v2, 26 }
  0x9e   :  { %v463_v11 = vshll.u32 %v455_v4, 6  ;;  %v466_v13 = vshrl.u32 %v454_v3, 26  ;;  %v467_v14 = vshrl.u32 %v455_v4, 26  ;;  %v468_v15 = vor.u32 %v464_v6, %v460_v5 }
  0x9f   :  { %v476_v16 = vadd.s32 %v456_v7, %v1571_v24  ;;  %v477_v17 = vadd.s32 %v457_v8, %v1571_v24  ;;  %v458_v18 = vadd.s32 %v454_v3, %v438_v54  ;;  %v469_v19 = vor.u32 %v465_v12, %v461_v9 }
  0xa0   :  { %v470_v20 = vor.u32 %v466_v13, %v462_v10  ;;  %v472_v21 = vxor.u32 %v468_v15, %v456_v7  ;;  %v459_v22 = vadd.s32 %v455_v4, %v439_v58  ;;  %v471_v23 = vor.u32 %v467_v14, %v463_v11 }
  0xa1   :  { %v473_v25 = vxor.u32 %v469_v19, %v457_v8  ;;  %v488_v26 = vshrl.u32 %v476_v16, 9  ;;  %v489_v28 = vshrl.u32 %v477_v17, 9  ;;  %v478_v35 = vadd.s32 %v458_v18, %v1571_v24 }
  0xa2   :  { %v480_v27 = vadd.s32 %v472_v21, %v1565_v1  ;;  %v474_v29 = vxor.u32 %v470_v20, %v458_v18  ;;  %v475_v32 = vxor.u32 %v471_v23, %v459_v22  ;;  %v479_v50 = vadd.s32 %v459_v22, %v1571_v24 }
  0xa3   :  { %v481_v30 = vadd.s32 %v473_v25, %v1565_v1  ;;  %v492_v34 = vor.u32 1065353216, %v488_v26  ;;  %v493_v36 = vor.u32 1065353216, %v489_v28  ;;  %v490_v44 = vshrl.u32 %v478_v35, 9 }
  0xa4   :  { %v484_v31 = vadd.s32 5, %v480_v27  ;;  %v482_v38 = vadd.s32 %v474_v29, %v1565_v1  ;;  %v483_v41 = vadd.s32 %v475_v32, %v1565_v1  ;;  %v491_v57 = vshrl.u32 %v479_v50, 9 }
  0xa5   :  { %v485_v33 = vadd.s32 5, %v481_v30  ;;  %v512_v43 = vsub.f32 2.0, %v492_v34  ;;  %v513_v45 = vsub.f32 2.0, %v493_v36  ;;  %v494_v53 = vor.u32 1065353216, %v490_v44 }
  0xa6   :  { %v500_v37 = vshrl.u32 %v484_v31, 9  ;;  %v486_v47 = vadd.s32 5, %v482_v38  ;;  %v487_v51 = vadd.s32 5, %v483_v41  ;;  %v1609_v0 = vor.u32 1065353216, %v491_v57 }
  0xa7   :  { %v501_v39 = vshrl.u32 %v485_v33, 9  ;;  %1489 = vlog2.f32 %v512_v43  ;;  %v514_v59 = vsub.f32 2.0, %v494_v53  ;;  %v1545_v20 = vmov 683565275  }
  0xa8   :  { %v504_v40 = vor.u32 1065353216, %v500_v37  ;;  %1491 = vlog2.f32 %v513_v45  ;;  %v502_v54 = vshrl.u32 %v486_v47, 9  ;;  %v503_v58 = vshrl.u32 %v487_v51, 9 }
  0xa9   :  { %v505_v42 = vor.u32 1065353216, %v501_v39  ;;  %1493 = vlog2.f32 %v514_v59  ;;  %v515_v9 = vsub.f32 2.0, %v1609_v0  ;;  %v1546_v22 = vmov 2475754826  }
  0xaa   :  { %v1600_v46 = vmul.f32 6.2831855, %v504_v40  ;;  %v506_v63 = vor.u32 1065353216, %v502_v54  ;;  %v507_v2 = vor.u32 1065353216, %v503_v58  ;;  %v1547_v25 = vmov 2131351028  }
  0xab   :  { %v1602_v48 = vmul.f32 6.2831855, %v505_v42  ;;  %v1548_v28 = vmov 2102212464   ;;  %v1549_v30 = vmov 920167782  }
  0xac   :  { %v563_v49 = vand.u32 2139095040, %v1600_v46  ;;  %v560_v60 = vand.u32 2147483647, %v1600_v46  ;;  %v1613_v6 = vmul.f32 6.2831855, %v506_v63 }
  0xad   :  { %v666_v52 = vand.u32 2139095040, %v1602_v48  ;;  %v663_v24 = vand.u32 2147483647, %v1602_v48  ;;  %v1618_v10 = vmul.f32 6.2831855, %v507_v2 }
  0xae   :  { %v564_v1 = vshrl.u32 %v563_v49, 23  ;;  %v567_v3 = vand.u32 8388607, %v560_v60  ;;  %v766_v14 = vand.u32 2147483647, %v1613_v6  ;;  %v769_v18 = vand.u32 2139095040, %v1613_v6 }
  0xaf   :  { %v667_v55 = vshrl.u32 %v666_v52, 23  ;;  %v670_v7 = vand.u32 8388607, %v663_v24  ;;  %v1550_v39 = vmov 1326507024  }
  0xb0   :  { %v1434_v56 = vadd.s32 4294967169, %v564_v1  ;;  %v568_v12 = vor.u32 8388608, %v567_v3 }
  0xb1   :  { %v1438_v62 = vadd.s32 4294967169, %v667_v55  ;;  %v1490_v5 = vpop.eup %1489  ;;  %v671_v17 = vor.u32 8388608, %v670_v7 }
  0xb2   :  { %v570_v61 = vadd.s32 1, %v1434_v56  ;;  %v1492_v8 = vpop.eup %1491  ;;  %v517_v15 = vmul.f32 0.6931472, %v1490_v5  ;;  %v1636_v41 = vshll.u32 %v568_v12, 8 }
  0xb3   :  { %v673_v4 = vadd.s32 1, %v1438_v62  ;;  %v519_v16 = vmul.f32 0.6931472, %v1492_v8  ;;  %v1494_v42 = vpop.eup %1493  ;;  %v1645_v55 = vshll.u32 %v671_v17, 8  ;;  %v770_v62 = vshrl.u32 %v769_v18, 23 }
  0xb4   :  { %vm571_vm0 = vcmp.gt.s32.totalorder %v570_v61, 0  ;;  %v1632_v37 = vmul.f32 -2.0, %v517_v15  ;;  %v1642_v1 = vmul.f32 0.6931472, %v1494_v42 }
  0xb5   :  { %v572_v11 = vsel %vm571_vm0, %v570_v61, 0  ;;  %vm674_vm1 = vcmp.gt.s32.totalorder %v673_v4, 0  ;;  %v1638_v49 = vmul.f32 -2.0, %v519_v16 }
  0xb6   :  { %v574_v13 = vand.u32 31, %v572_v11  ;;  %v573_v27 = vshrl.u32 %v572_v11, 5  ;;  %v675_v32 = vsel %vm674_vm1, %v673_v4, 0  ;;  %1495 = vrsqrt.f32 %v1632_v37 }
  0xb7   :  { %v677_v47 = vand.u32 31, %v675_v32  ;;  %1497 = vrsqrt.f32 %v1638_v49  ;;  %v676_v4 = vshrl.u32 %v675_v32, 5  ;;  %vm530_vm6 = vcmp.eq.f32.partialorder %v1632_v37, inf }
  0xb8   :  { %v575_v19 = vsub.s32 32, %v574_v13  ;;  %v577_v21 = vshll.u32 %v1545_v20, %v574_v13  ;;  %v580_v23 = vshll.u32 %v1546_v22, %v574_v13  ;;  %v583_v26 = vshll.u32 %v1547_v25, %v574_v13 }
  0xb9   :  { %v586_v29 = vshll.u32 %v1548_v28, %v574_v13  ;;  %v589_v31 = vshll.u32 %v1549_v30, %v574_v13  ;;  %vm592_vm2 = vcmp.lt.s32.totalorder %v573_v27, 1  ;;  %vm595_vm3 = vcmp.lt.s32.totalorder %v573_v27, 4 }
  0xba   :  { %v576_v33 = vshrl.u32 %v1545_v20, %v575_v19  ;;  %v578_v34 = vshrl.u32 %v1546_v22, %v575_v19  ;;  %v581_v35 = vshrl.u32 %v1547_v25, %v575_v19  ;;  %v584_v36 = vshrl.u32 %v1548_v28, %v575_v19 }
  0xbb   :  { %v587_v38 = vshrl.u32 %v1549_v30, %v575_v19  ;;  %v590_v40 = vshrl.u32 %v1550_v39, %v575_v19  ;;  %vm594_vm4 = vcmp.lt.s32.totalorder %v573_v27, 3  ;;  %vm593_vm5 = vcmp.lt.s32.totalorder %v573_v27, 2 }
  0xbc   :  { %v579_v43 = vor.u32 %v578_v34, %v577_v21  ;;  %v582_v44 = vor.u32 %v581_v35, %v580_v23  ;;  %v585_v45 = vor.u32 %v584_v36, %v583_v26  ;;  %v678_v58 = vsub.s32 32, %v677_v47 }
  0xbd   :  { %v588_v50 = vor.u32 %v587_v38, %v586_v29  ;;  %v591_v51 = vor.u32 %v590_v40, %v589_v31  ;;  %v680_v11 = vshll.u32 %v1545_v20, %v677_v47  ;;  %v683_v19 = vshll.u32 %v1546_v22, %v677_v47 }
  0xbe   :  { %v596_v52 = vsel %vm592_vm2, %v576_v33, %v579_v43  ;;  %v597_v53 = vsel %vm595_vm3, %v585_v45, 2102212464  ;;  %v600_v57 = vsel %vm592_vm2, %v579_v43, %v582_v44  ;;  %v604_v61 = vsel %vm592_vm2, %v582_v44, %v585_v45 }
  0xbf   :  { %v598_v54 = vsel %vm594_vm4, %v582_v44, %v597_v53  ;;  %v601_v59 = vsel %vm595_vm3, %v588_v50, 920167782  ;;  %v605_v2 = vsel %vm595_vm3, %v591_v51, 1326507024  ;;  %v679_v8 = vshrl.u32 %v1545_v20, %v678_v58 }
  0xc0   :  { %v599_v56 = vsel %vm593_vm5, %v596_v52, %v598_v54  ;;  %v602_v63 = vsel %vm594_vm4, %v585_v45, %v601_v59  ;;  %v606_v7 = vsel %vm594_vm4, %v588_v50, %v605_v2  ;;  %v681_v16 = vshrl.u32 %v1546_v22, %v678_v58  ;;  %v1496_v42 = vpop.eup %1495 }
  0xc1   :  { %v615_v3 = vmul.u32 %v1636_v41, %v599_v56  ;;  %v603_v5 = vsel %vm593_vm5, %v600_v57, %v602_v63  ;;  %v607_v12 = vsel %vm593_vm5, %v604_v61, %v606_v7  ;;  %v684_v21 = vshrl.u32 %v1547_v25, %v678_v58  ;;  %v1498_v45 = vpop.eup %1497 }
  0xc2   :  { %v1662_v13 = vmul.u32.u64.low %v1636_v41, %v603_v5  ;;  %v1663_v15 = vmul.u32.u64.high %v1636_v41, %v603_v5, %v1662_v13  ;;  %v1668_v17 = vmul.u32.u64.low %v1636_v41, %v607_v12  ;;  %v1669_v18 = vmul.u32.u64.high %v1636_v41, %v607_v12, %v1668_v17 }
  0xc3   :  { %v682_v23 = vor.u32 %v681_v16, %v680_v11  ;;  %v686_v26 = vshll.u32 %v1547_v25, %v677_v47  ;;  %v687_v27 = vshrl.u32 %v1548_v28, %v678_v58  ;;  %v689_v29 = vshll.u32 %v1548_v28, %v677_v47 }
  0xc4   :  { %v685_v31 = vor.u32 %v684_v21, %v683_v19  ;;  %v690_v32 = vshrl.u32 %v1549_v30, %v678_v58  ;;  %v692_v33 = vshll.u32 %v1549_v30, %v677_v47  ;;  %v693_v34 = vshrl.u32 %v1550_v39, %v678_v58 }
  0xc5   :  { %v618_v35 = vadd.s32 1, %v1663_v15  ;;  %v688_v36 = vor.u32 %v687_v27, %v686_v26  ;;  %vm695_vm7 = vcmp.lt.s32.totalorder %v676_v4, 1  ;;  %v1442_v38 = vadd.s32 4294967169, %v770_v62 }
  0xc6   :  { %vm617_vm8 = vc.u32 %v1669_v18, %v1662_v13  ;;  %v691_v40 = vor.u32 %v690_v32, %v689_v29  ;;  %v694_v41 = vor.u32 %v693_v34, %v692_v33  ;;  %vm696_vm9 = vcmp.lt.s32.totalorder %v676_v4, 2 }
  0xc7   :  { %v619_v43 = vsel %vm617_vm8, %v618_v35, %v1663_v15  ;;  %vm697_vm10 = vcmp.lt.s32.totalorder %v676_v4, 3  ;;  %vm698_vm11 = vcmp.lt.s32.totalorder %v676_v4, 4  ;;  %v699_v44 = vsel %vm695_vm7, %v679_v8, %v682_v23 }
  0xc8   :  { %v620_v47 = vadd.s32 %v619_v43, %v615_v3  ;;  %v700_v50 = vsel %vm698_vm11, %v688_v36, 2102212464  ;;  %v703_v51 = vsel %vm695_vm7, %v682_v23, %v685_v31  ;;  %v704_v52 = vsel %vm698_vm11, %v691_v40, 920167782 }
  0xc9   :  { %vm532_vm12 = vcmp.eq.f32.partialorder %v1632_v37, 0.0  ;;  %v701_v53 = vsel %vm697_vm10, %v685_v31, %v700_v50  ;;  %v705_v54 = vsel %vm697_vm10, %v688_v36, %v704_v52  ;;  %v707_v56 = vsel %vm695_vm7, %v685_v31, %v688_v36 }
  0xca   :  { %v708_v57 = vsel %vm698_vm11, %v694_v41, 1326507024  ;;  %v529_v58 = vmul.f32 %v1496_v42, %v1632_v37  ;;  %v621_v59 = vadd.s32 536870912, %v620_v47  ;;  %v706_v61 = vsel %vm696_vm9, %v703_v51, %v705_v54 }
  0xcb   :  { %v709_v62 = vsel %vm697_vm10, %v691_v40, %v708_v57  ;;  %v702_v63 = vsel %vm696_vm9, %v699_v44, %v701_v53  ;;  %v1696_v3 = vmul.u32.u64.low %v1645_v55, %v706_v61  ;;  %v1697_v5 = vmul.u32.u64.high %v1645_v55, %v706_v61, %v1696_v3 }
  0xcc   :  { %v710_v2 = vsel %vm696_vm9, %v707_v56, %v709_v62  ;;  %v536_v7 = vmul.f32 %v1498_v45, %v1638_v49  ;;  %v622_v8 = vshrl.u32 %v621_v59, 30  ;;  %vm537_vm13 = vcmp.eq.f32.partialorder %v1638_v49, inf }
  0xcd   :  { %v1701_v11 = vmul.u32.u64.low %v1645_v55, %v710_v2  ;;  %v1702_v12 = vmul.u32.u64.high %v1645_v55, %v710_v2, %v1701_v11  ;;  %v773_v15 = vand.u32 8388607, %v766_v14  ;;  %v776_v16 = vadd.s32 1, %v1442_v38 }
  0xce   :  { %v872_v4 = vand.u32 2139095040, %v1618_v10  ;;  %v533_v17 = vand.u32 2147483648, %v1632_v37  ;;  %vm539_vm14 = vcmp.eq.f32.partialorder %v1638_v49, 0.0  ;;  %v623_v19 = vshll.u32 %v622_v8, 30 }
  0xcf   :  { %v718_v21 = vmul.u32 %v1645_v55, %v702_v63  ;;  %v540_v23 = vand.u32 2147483648, %v1638_v49  ;;  %v646_v26 = vsub.s32 4, %v622_v8  ;;  %v721_v27 = vadd.s32 1, %v1697_v5 }
  0xd0   :  { %vm777_vm15 = vcmp.gt.s32.totalorder %v776_v16, 0  ;;  %v531_v29 = vsel %vm530_vm6, %v1632_v37, %v529_v58  ;;  %v538_v31 = vsel %vm537_vm13, %v1638_v49, %v536_v7  ;;  %v1717_v32 = vsub.s32 %v620_v47, %v623_v19 }
  0xd1   :  { %vm720_vm0 = vc.u32 %v1702_v12, %v1696_v3  ;;  %v774_v34 = vor.u32 8388608, %v773_v15  ;;  %v778_v55 = vsel %vm777_vm15, %v776_v16, 0  ;;  %v873_v35 = vshrl.u32 %v872_v4, 23 }
  0xd2   :  { %v722_v33 = vsel %vm720_vm0, %v721_v27, %v1697_v5  ;;  %vm562_vm1 = vcmp.lt.s32.totalorder %v1600_v46, 0  ;;  %v626_v36 = vsub.s32 0, %v1717_v32  ;;  %v869_v40 = vand.u32 2147483647, %v1618_v10 }
  0xd3   :  { %v723_v38 = vadd.s32 %v722_v33, %v718_v21  ;;  %v1725_v41 = vmul.f32 -2.0, %v1642_v1  ;;  %vm1729_vm2 = vcmp.le.f32.partialorder %v560_v60, 0.7853982  ;;  %v647_v43 = vsel %vm562_vm1, %v646_v26, %v622_v8 }
  0xd4   :  { %v780_v44 = vand.u32 31, %v778_v55  ;;  %v1737_v45 = vsel %vm532_vm12, %v533_v17, %v531_v29  ;;  %v1741_v47 = vsel %vm539_vm14, %v540_v23, %v538_v31  ;;  %v616_v1 = vadd.s32 %v1662_v13, %v1669_v18 }
  0xd5   :  { %v1435_v60 = vmin.u32 %v626_v36, %v1717_v32  ;;  %v724_v50 = vadd.s32 536870912, %v723_v38  ;;  %v1746_v52 = vshll.u32 %v774_v34, 8  ;;  %v1446_v53 = vadd.s32 4294967169, %v873_v35 }
  0xd6   :  { %v781_v51 = vsub.s32 32, %v780_v44  ;;  %v1750_v37 = vsel %vm1729_vm2, 0, %v647_v43  ;;  %v1753_v56 = vadd.s32 %v1696_v3, %v1702_v12  ;;  %v1757_v49 = vand.u32 8388607, %v869_v40 }
  0xd7   :  { %v628_v54 = vclz %v1435_v60  ;;  %v1760_v13 = vand.u32 3, %v1750_v37  ;;  %v1762_v18 = vshrl.u32 %v724_v50, 30  ;;  %v783_v57 = vshll.u32 %v1545_v20, %v780_v44 }
  0xd8   :  { %v784_v58 = vshrl.u32 %v1546_v22, %v781_v51  ;;  %v779_v61 = vshrl.u32 %v778_v55, 5  ;;  %v786_v62 = vshll.u32 %v1546_v22, %v780_v44  ;;  %v787_v63 = vshrl.u32 %v1547_v25, %v781_v51 }
  0xd9   :  { %v1436_v59 = vadd.s32 4294967294, %v628_v54  ;;  %v726_v2 = vshll.u32 %v1762_v18, 30  ;;  %v792_v3 = vshll.u32 %v1548_v28, %v780_v44  ;;  %v793_v5 = vshrl.u32 %v1549_v30, %v781_v51 }
  0xda   :  { %v879_v7 = vadd.s32 1, %v1446_v53  ;;  %v789_v8 = vshll.u32 %v1547_v25, %v780_v44  ;;  %v790_v11 = vshrl.u32 %v1548_v28, %v781_v51  ;;  %v795_v12 = vshll.u32 %v1549_v30, %v780_v44 }
  0xdb   :  { %vm1437_vm3 = vcmp.lt.s32.totalorder %v1436_v59, 0  ;;  %v1774_v16 = vsub.s32 %v723_v38, %v726_v2  ;;  %v785_v4 = vor.u32 %v784_v58, %v783_v57  ;;  %v796_v17 = vshrl.u32 %v1550_v39, %v781_v51 }
  0xdc   :  { %v631_v15 = vsel %vm1437_vm3, 0, %v1436_v59  ;;  %v788_v26 = vor.u32 %v787_v63, %v786_v62  ;;  %v782_v29 = vshrl.u32 %v1545_v20, %v781_v51  ;;  %v794_v31 = vor.u32 %v793_v5, %v792_v3 }
  0xdd   :  { %v632_v19 = vsub.s32 32, %v631_v15  ;;  %v633_v21 = vshll.u32 %v1717_v32, %v631_v15  ;;  %v636_v23 = vsub.s32 4294967266, %v631_v15  ;;  %v729_v27 = vsub.s32 0, %v1774_v16 }
  0xde   :  { %vm798_vm4 = vcmp.lt.s32.totalorder %v779_v61, 1  ;;  %v791_v55 = vor.u32 %v790_v11, %v789_v8  ;;  %vm801_vm5 = vcmp.lt.s32.totalorder %v779_v61, 4  ;;  %v797_v36 = vor.u32 %v796_v17, %v795_v12 }
  0xdf   :  { %v634_v33 = vshrl.u32 %v616_v1, %v632_v19  ;;  %v637_v34 = vadd.s32 127, %v636_v23  ;;  %v1439_v35 = vmin.u32 %v729_v27, %v1774_v16  ;;  %vm799_vm6 = vcmp.lt.s32.totalorder %v779_v61, 2 }
  0xe0   :  { %vm800_vm7 = vcmp.lt.s32.totalorder %v779_v61, 3  ;;  %vm665_vm8 = vcmp.lt.s32.totalorder %v1602_v48, 0  ;;  %v803_v32 = vsel %vm801_vm5, %v791_v55, 2102212464  ;;  %v806_v44 = vsel %vm798_vm4, %v785_v4, %v788_v26 }
  0xe1   :  { %v635_v38 = vor.u32 %v634_v33, %v633_v21  ;;  %v638_v43 = vshll.u32 %v637_v34, 23  ;;  %v731_v60 = vclz %v1439_v35  ;;  %v802_v50 = vsel %vm798_vm4, %v782_v29, %v785_v4 }
  0xe2   :  { %v804_v1 = vsel %vm800_vm7, %v788_v26, %v803_v32  ;;  %v807_v51 = vsel %vm801_vm5, %v794_v31, 920167782  ;;  %v810_v58 = vsel %vm798_vm4, %v788_v26, %v791_v55  ;;  %vm1791_vm9 = vcmp.le.f32.partialorder %v663_v24, 0.7853982 }
  0xe3   :  { %v639_v53 = vor.u32 4788187, %v638_v43  ;;  %v642_v54 = vcvt.s32.f32 %v635_v38  ;;  %v808_v57 = vsel %vm800_vm7, %v791_v55, %v807_v51  ;;  %v1440_v62 = vadd.s32 4294967294, %v731_v60 }
  0xe4   :  { %v749_v63 = vsub.s32 4, %v1762_v18  ;;  %v809_v2 = vsel %vm799_vm6, %v806_v44, %v808_v57  ;;  %v811_v3 = vsel %vm801_vm5, %v797_v36, 1326507024  ;;  %v805_v24 = vsel %vm799_vm6, %v802_v50, %v804_v1 }
  0xe5   :  { %v640_v5 = vand.u32 2147483647, %v639_v53  ;;  %v812_v8 = vsel %vm800_vm7, %v794_v31, %v811_v3  ;;  %v1800_v11 = vmul.u32.u64.low %v1746_v52, %v809_v2  ;;  %v1801_v12 = vmul.u32.u64.high %v1746_v52, %v809_v2, %v1800_v11 }
  0xe6   :  { %vm1441_vm10 = vcmp.lt.s32.totalorder %v1440_v62, 0  ;;  %v813_v15 = vsel %vm799_vm6, %v810_v58, %v812_v8  ;;  %vm880_vm11 = vcmp.gt.s32.totalorder %v879_v7, 0  ;;  %v821_v33 = vmul.u32 %v1746_v52, %v805_v24 }
  0xe7   :  { %v643_v4 = vmul.f32 %v642_v54, %v640_v5  ;;  %v734_v17 = vsel %vm1441_vm10, 0, %v1440_v62  ;;  %v1807_v19 = vmul.u32.u64.low %v1746_v52, %v813_v15  ;;  %v1808_v21 = vmul.u32.u64.high %v1746_v52, %v813_v15, %v1807_v19 }
  0xe8   :  { %v735_v23 = vsub.s32 32, %v734_v17  ;;  %v736_v26 = vshll.u32 %v1774_v16, %v734_v17  ;;  %v739_v27 = vsub.s32 4294967266, %v734_v17  ;;  %v881_v29 = vsel %vm880_vm11, %v879_v7, 0 }
  0xe9   :  { %v644_v31 = vxor.u32 2147483648, %v643_v4  ;;  %v824_v34 = vadd.s32 1, %v1801_v12  ;;  %v883_v55 = vand.u32 31, %v881_v29  ;;  %v750_v36 = vsel %vm665_vm8, %v749_v63, %v1762_v18 }
  0xea   :  { %v737_v61 = vshrl.u32 %v1753_v56, %v735_v23  ;;  %v740_v35 = vadd.s32 127, %v739_v27  ;;  %v877_v38 = vor.u32 8388608, %v1757_v49  ;;  %vm823_vm12 = vc.u32 %v1808_v21, %v1800_v11 }
  0xeb   :  { %v645_v16 = vsel %vm562_vm1, %v644_v31, %v643_v4  ;;  %v884_v7 = vsub.s32 32, %v883_v55  ;;  %v1069_v52 = vadd.s32 3, %v1750_v37  ;;  %v825_v44 = vsel %vm823_vm12, %v824_v34, %v1801_v12 }
  0xec   :  { %v648_v56 = vsel %vm1729_vm2, %v1600_v46, %v645_v16  ;;  %v738_v43 = vor.u32 %v737_v61, %v736_v26  ;;  %v741_v32 = vshll.u32 %v740_v35, 23  ;;  %v752_v49 = vsel %vm1791_vm9, 0, %v750_v36 }
  0xed   :  { %1499 = vcosq.f32 %v648_v56  ;;  %v826_v18 = vadd.s32 %v825_v44, %v821_v33  ;;  %v1829_v60 = vshrl.u32 %v881_v29, 5  ;;  %v886_v37 = vshll.u32 %v1545_v20, %v883_v55 }
  0xee   :  { %1501 = vsinq.f32 %v648_v56  ;;  %v742_v50 = vor.u32 4788187, %v741_v32  ;;  %v745_v1 = vcvt.s32.f32 %v738_v43  ;;  %v887_v42 = vshrl.u32 %v1546_v22, %v884_v7 }
  0xef   :  { %v827_v51 = vadd.s32 536870912, %v826_v18  ;;  %v889_v53 = vshll.u32 %v1546_v22, %v883_v55  ;;  %v892_v54 = vshll.u32 %v1547_v25, %v883_v55  ;;  %vm655_vm13 = vcmp.eq.s32.totalorder %v1760_v13, 0 }
  0xf0   :  { %v743_v57 = vand.u32 2147483647, %v742_v50  ;;  %v890_v58 = vshrl.u32 %v1547_v25, %v884_v7  ;;  %v893_v62 = vshrl.u32 %v1548_v28, %v884_v7  ;;  %v895_v63 = vshll.u32 %v1548_v28, %v883_v55 }
  0xf1   :  { %vm654_vm14 = vcmp.lt.s32.totalorder %v1760_v13, 2  ;;  %vm658_vm15 = vcmp.eq.s32.totalorder %v1760_v13, 2  ;;  %v1841_v2 = vand.u32 3, %v752_v49  ;;  %v1843_v3 = vshrl.u32 %v827_v51, 30 }
  0xf2   :  { %v896_v22 = vshrl.u32 %v1549_v30, %v884_v7  ;;  %vm652_vm0 = vweird.f32 %v1600_v46  ;;  %v746_v5 = vmul.f32 %v745_v1, %v743_v57  ;;  %v898_v8 = vshll.u32 %v1549_v30, %v883_v55 }
  0xf3   :  { %v899_v25 = vshrl.u32 %v1550_v39, %v884_v7  ;;  %v1849_v12 = vshll.u32 %v877_v38, 8  ;;  %v829_v28 = vshll.u32 %v1843_v3, 30  ;;  %v885_v24 = vshrl.u32 %v1545_v20, %v884_v7 }
  0xf4   :  { %v888_v15 = vor.u32 %v887_v42, %v886_v37  ;;  %v894_v4 = vor.u32 %v893_v62, %v892_v54  ;;  %v747_v17 = vxor.u32 2147483648, %v746_v5  ;;  %v891_v19 = vor.u32 %v890_v58, %v889_v53 }
  0xf5   :  { %v897_v23 = vor.u32 %v896_v22, %v895_v63  ;;  %vm904_vm1 = vcmp.lt.s32.totalorder %v1829_v60, 4  ;;  %v1854_v26 = vsub.s32 %v826_v18, %v829_v28  ;;  %vm901_vm2 = vcmp.lt.s32.totalorder %v1829_v60, 1 }
  0xf6   :  { %v906_v30 = vsel %vm904_vm1, %v894_v4, 2102212464  ;;  %v1070_v39 = vand.u32 3, %v1069_v52  ;;  %v748_v27 = vsel %vm665_vm8, %v747_v17, %v746_v5  ;;  %v900_v29 = vor.u32 %v899_v25, %v898_v8 }
  0xf7   :  { %vm902_vm3 = vcmp.lt.s32.totalorder %v1829_v60, 2  ;;  %vm903_vm4 = vcmp.lt.s32.totalorder %v1829_v60, 3  ;;  %v1500_v20 = vpop.eup %1499  ;;  %v751_v31 = vsel %vm1791_vm9, %v1602_v48, %v748_v27  ;;  %v832_v33 = vsub.s32 0, %v1854_v26 }
  0xf8   :  { %v905_v34 = vsel %vm901_vm2, %v885_v24, %v888_v15  ;;  %v907_v55 = vsel %vm903_vm4, %v891_v19, %v906_v30  ;;  %v1502_v61 = vpop.eup %1501  ;;  %v659_v35 = vxor.u32 2147483648, %v1500_v20  ;;  %1503 = vcosq.f32 %v751_v31 }
  0xf9   :  { %v909_v36 = vsel %vm901_vm2, %v888_v15, %v891_v19  ;;  %v910_v38 = vsel %vm904_vm1, %v897_v23, 920167782  ;;  %v656_v16 = vxor.u32 2147483648, %v1502_v61  ;;  %1505 = vsinq.f32 %v751_v31 }
  0xfa   :  { %v1443_v59 = vmin.u32 %v832_v33, %v1854_v26  ;;  %v1173_v7 = vadd.s32 3, %v752_v49  ;;  %v660_v52 = vsel %vm658_vm15, %v659_v35, %v1502_v61  ;;  %v908_v56 = vsel %vm902_vm3, %v905_v34, %v907_v55 }
  0xfb   :  { %v911_v43 = vsel %vm903_vm4, %v894_v4, %v910_v38  ;;  %v913_v32 = vsel %vm901_vm2, %v891_v19, %v894_v4  ;;  %v657_v44 = vsel %vm655_vm13, %v1500_v20, %v656_v16  ;;  %vm758_vm5 = vcmp.eq.s32.totalorder %v1841_v2, 0 }
  0xfc   :  { %v834_v18 = vclz %v1443_v59  ;;  %v912_v49 = vsel %vm902_vm3, %v909_v36, %v911_v43  ;;  %v914_v50 = vsel %vm904_vm1, %v900_v29, 1326507024  ;;  %v661_v1 = vsel %vm654_vm14, %v657_v44, %v660_v52 }
  0xfd   :  { %vm757_vm6 = vcmp.lt.s32.totalorder %v1841_v2, 2  ;;  %v915_v37 = vsel %vm903_vm4, %v897_v23, %v914_v50  ;;  %v1897_v51 = vmul.u32.u64.low %v1849_v12, %v912_v49  ;;  %v1898_v42 = vmul.u32.u64.high %v1849_v12, %v912_v49, %v1897_v51 }
  0xfe   :  { %v662_v53 = vsel %vm652_vm0, nan, %v661_v1  ;;  %vm755_vm7 = vweird.f32 %v1602_v48  ;;  %v822_v54 = vadd.s32 %v1800_v11, %v1808_v21  ;;  %v1444_v13 = vadd.s32 4294967294, %v834_v18 }
  0xff   :  { %v916_v57 = vsel %vm902_vm3, %v913_v32, %v915_v37  ;;  %v924_v63 = vmul.u32 %v1849_v12, %v908_v56  ;;  %vm1071_vm8 = vcmp.lt.s32.totalorder %v1070_v39, 2  ;;  %vm1072_vm10 = vcmp.eq.s32.totalorder %v1070_v39, 0 }
 0x100   :  { %v1909_v58 = vmul.u32.u64.low %v1849_v12, %v916_v57  ;;  %v1910_v62 = vmul.u32.u64.high %v1849_v12, %v916_v57, %v1909_v58  ;;  %vm1445_vm9 = vcmp.lt.s32.totalorder %v1444_v13, 0  ;;  %vm1075_vm11 = vcmp.eq.s32.totalorder %v1070_v39, 2 }
 0x101   :  { %v1174_v22 = vand.u32 3, %v1173_v7  ;;  %v837_v5 = vsel %vm1445_vm9, 0, %v1444_v13  ;;  %v927_v8 = vadd.s32 1, %v1898_v42  ;;  %v1074_v25 = vsel %vm1072_vm10, %v1500_v20, %v656_v16 }
 0x102   :  { %v1077_v11 = vsel %vm1075_vm11, %v659_v35, %v1502_v61  ;;  %vm761_vm12 = vcmp.eq.s32.totalorder %v1841_v2, 2  ;;  %v838_v21 = vsub.s32 32, %v837_v5  ;;  %v839_v60 = vshll.u32 %v1854_v26, %v837_v5  ;;  %v1504_v24 = vpop.eup %1503 }
 0x103   :  { %v842_v28 = vsub.s32 4294967266, %v837_v5  ;;  %vm926_vm13 = vc.u32 %v1910_v62, %v1897_v51  ;;  %v972_v12 = vmul.f32 %v662_v53, %v1737_v45  ;;  %v1078_v15 = vsel %vm1071_vm8, %v1074_v25, %v1077_v11  ;;  %v1506_v4 = vpop.eup %1505 }
 0x104   :  { %vm1175_vm14 = vcmp.lt.s32.totalorder %v1174_v22, 2  ;;  %v762_v17 = vxor.u32 2147483648, %v1504_v24  ;;  %v840_v19 = vshrl.u32 %v822_v54, %v838_v21  ;;  %v928_v30 = vsel %vm926_vm13, %v927_v8, %v1898_v42 }
 0x105   :  { %v843_v23 = vadd.s32 127, %v842_v28  ;;  %v759_v27 = vxor.u32 2147483648, %v1506_v4  ;;  %v929_v29 = vadd.s32 %v928_v30, %v924_v63  ;;  %vm1176_vm15 = vcmp.eq.s32.totalorder %v1174_v22, 0 }
 0x106   :  { %vm1179_vm1 = vcmp.eq.s32.totalorder %v1174_v22, 2  ;;  %v763_v26 = vsel %vm761_vm12, %v762_v17, %v1506_v4  ;;  %v841_v20 = vor.u32 %v840_v19, %v839_v60  ;;  %v1079_v55 = vsel %vm652_vm0, nan, %v1078_v15 }
 0x107   :  { %v844_v31 = vshll.u32 %v843_v23, 23  ;;  %v1181_v33 = vsel %vm1179_vm1, %v762_v17, %v1506_v4  ;;  %v760_v39 = vsel %vm758_vm5, %v1504_v24, %v759_v27  ;;  %v930_v34 = vadd.s32 536870912, %v929_v29 }
 0x108   :  { %v1178_v61 = vsel %vm1176_vm15, %v1504_v24, %v759_v27  ;;  %v764_v35 = vsel %vm757_vm6, %v760_v39, %v763_v26  ;;  %v848_v38 = vcvt.s32.f32 %v841_v20  ;;  %v852_v7 = vsub.s32 4, %v1843_v3 }
 0x109   :  { %v845_v36 = vor.u32 4788187, %v844_v31  ;;  %v1182_v16 = vsel %vm1175_vm14, %v1178_v61, %v1181_v33  ;;  %v765_v59 = vsel %vm755_vm7, nan, %v764_v35  ;;  %v1933_v52 = vshrl.u32 %v930_v34, 30 }
 0x10a   :  { %v1183_v56 = vsel %vm755_vm7, nan, %v1182_v16  ;;  %v973_v43 = vmul.f32 %v765_v59, %v1741_v47  ;;  %v1392_v2 = vmul.f32 %v1079_v55, %v1737_v45  ;;  %1507 = vrsqrt.f32 %v1725_v41 }
 0x10b   :  { %v846_v46 = vand.u32 2147483647, %v845_v36  ;;  %v1393_v32 = vmul.f32 %v1183_v56, %v1741_v47  ;;  %v932_v44 = vshll.u32 %v1933_v52, 30  ;;  %1509 = vlog2.f32 %v515_v9 }
 0x10c   :  { %v1396_v49 = vmul.f32 0.05, %v972_v12  ;;  %v1397_v50 = vmul.f32 0.05, %v973_v43  ;;  %vm768_vm0 = vcmp.lt.s32.totalorder %v1613_v6, 0  ;;  %vm544_vm4 = vcmp.eq.f32.partialorder %v1725_v41, inf }
 0x10d   :  { %v849_v18 = vmul.f32 %v848_v38, %v846_v46  ;;  %v933_v48 = vsub.s32 %v929_v29, %v932_v44  ;;  %v1408_v1 = vmul.f32 0.05, %v1392_v2  ;;  %v1409_v37 = vmul.f32 0.05, %v1393_v32 }
 0x10e   :  { %vm767_vm2 = vcmp.le.f32.partialorder %v766_v14, 0.7853982  ;;  %v853_v47 = vsel %vm768_vm0, %v852_v7, %v1843_v3  ;;  %1404 = vst [vmem:[#allocation4] sm:$0xff] %v1396_v49  ;;  %1405 = vst [vmem:[#allocation4 + $0x8] sm:$0xff] %v1397_v50  ;;  %v925_v3 = vadd.s32 %v1897_v51, %v1910_v62  ;;  %vm858_vm5 = vweird.f32 %v1613_v6 }
 0x10f   :  { %v850_v45 = vxor.u32 2147483648, %v849_v18  ;;  %v935_v42 = vsub.s32 0, %v933_v48  ;;  %1416 = vst [vmem:[#allocation4 + $0x20] sm:$0xff] %v1408_v1  ;;  %1417 = vst [vmem:[#allocation4 + $0x28] sm:$0xff] %v1409_v37  ;;  %v855_v53 = vsel %vm767_vm2, 0, %v853_v47  ;;  %vm546_vm6 = vcmp.eq.f32.partialorder %v1725_v41, 0.0 }
 0x110   :  { %v1277_v57 = vadd.s32 3, %v855_v53  ;;  %v859_v5 = vand.u32 3, %v855_v53  ;;  %v547_v24 = vand.u32 2147483648, %v1725_v41  ;;  %v955_v35 = vsub.s32 4, %v1933_v52 }
 0x111   :  { %v851_v0 = vsel %vm768_vm0, %v850_v45, %v849_v18  ;;  %v1447_v54 = vmin.u32 %v935_v42, %v933_v48  ;;  %vm870_vm13 = vcmp.le.f32.partialorder %v869_v40, 0.7853982  ;;  %vm871_vm14 = vcmp.lt.s32.totalorder %v1618_v10, 0 }
 0x112   :  { %v854_v9 = vsel %vm767_vm2, %v1613_v6, %v851_v0  ;;  %v1278_v25 = vand.u32 3, %v1277_v57  ;;  %vm861_vm7 = vcmp.eq.s32.totalorder %v859_v5, 0  ;;  %vm864_vm8 = vcmp.eq.s32.totalorder %v859_v5, 2 }
 0x113   :  { %1511 = vcosq.f32 %v854_v9  ;;  %v937_v13 = vclz %v1447_v54  ;;  %vm860_vm11 = vcmp.lt.s32.totalorder %v859_v5, 2  ;;  %v956_v46 = vsel %vm871_vm14, %v955_v35, %v1933_v52 }
 0x114   :  { %1513 = vsinq.f32 %v854_v9  ;;  %v1508_v58 = vpop.eup %1507  ;;  %vm1283_vm9 = vcmp.eq.s32.totalorder %v1278_v25, 2  ;;  %vm1280_vm10 = vcmp.eq.s32.totalorder %v1278_v25, 0  ;;  %vm1279_vm12 = vcmp.lt.s32.totalorder %v1278_v25, 2 }
 0x115   :  { %v1448_v63 = vadd.s32 4294967294, %v937_v13  ;;  %v1510_v14 = vpop.eup %1509  ;;  %v543_v22 = vmul.f32 %v1508_v58, %v1725_v41  ;;  %v958_v44 = vsel %vm870_vm13, 0, %v956_v46 }
 0x116   :  { %v523_v28 = vmul.f32 0.6931472, %v1510_v14  ;;  %v1381_v18 = vadd.s32 3, %v958_v44  ;;  %v962_v50 = vand.u32 3, %v958_v44 }
 0x117   :  { %vm1449_vm3 = vcmp.lt.s32.totalorder %v1448_v63, 0  ;;  %v545_v15 = vsel %vm544_vm4, %v1725_v41, %v543_v22 }
 0x118   :  { %v940_v8 = vsel %vm1449_vm3, 0, %v1448_v63  ;;  %v527_v30 = vmul.f32 -2.0, %v523_v28  ;;  %v548_v33 = vsel %vm546_vm6, %v547_v24, %v545_v15  ;;  %vm967_vm0 = vcmp.eq.s32.totalorder %v962_v50, 2 }
 0x119   :  { %v941_v11 = vsub.s32 32, %v940_v8  ;;  %v942_v21 = vshll.u32 %v933_v48, %v940_v8  ;;  %v945_v60 = vsub.s32 4294967266, %v940_v8  ;;  %v1382_v48 = vand.u32 3, %v1381_v18 }
 0x11a   :  { %1515 = vrsqrt.f32 %v527_v30  ;;  %vm551_vm15 = vcmp.eq.f32.partialorder %v527_v30, inf  ;;  %vm553_vm1 = vcmp.eq.f32.partialorder %v527_v30, 0.0  ;;  %v554_v37 = vand.u32 2147483648, %v527_v30 }
 0x11b   :  { %v943_v12 = vshrl.u32 %v925_v3, %v941_v11  ;;  %v946_v51 = vadd.s32 127, %v945_v60  ;;  %vm1387_vm2 = vcmp.eq.s32.totalorder %v1382_v48, 2  ;;  %vm964_vm3 = vcmp.eq.s32.totalorder %v962_v50, 0 }
 0x11c   :  { %vm1384_vm4 = vcmp.eq.s32.totalorder %v1382_v48, 0  ;;  %vm1383_vm6 = vcmp.lt.s32.totalorder %v1382_v48, 2 }
 0x11d   :  { %v1512_v62 = vpop.eup %1511  ;;  %v944_v19 = vor.u32 %v943_v12, %v942_v21  ;;  %v947_v23 = vshll.u32 %v946_v51, 23 }
 0x11e   :  { %v1514_v4 = vpop.eup %1513  ;;  %v865_v17 = vxor.u32 2147483648, %v1512_v62 }
 0x11f   :  { %v862_v27 = vxor.u32 2147483648, %v1514_v4  ;;  %v948_v26 = vor.u32 4788187, %v947_v23  ;;  %v951_v20 = vcvt.s32.f32 %v944_v19 }
 0x120   :  { %v866_v29 = vsel %vm864_vm8, %v865_v17, %v1514_v4  ;;  %v1285_v31 = vsel %vm1283_vm9, %v865_v17, %v1514_v4 }
 0x121   :  { %v863_v39 = vsel %vm861_vm7, %v1512_v62, %v862_v27  ;;  %v1282_v34 = vsel %vm1280_vm10, %v1512_v62, %v862_v27  ;;  %v949_v61 = vand.u32 2147483647, %v948_v26  ;;  %vm961_vm7 = vweird.f32 %v1618_v10 }
 0x122   :  { %v867_v55 = vsel %vm860_vm11, %v863_v39, %v866_v29  ;;  %v1286_v36 = vsel %vm1279_vm12, %v1282_v34, %v1285_v31 }
 0x123   :  { %v868_v38 = vsel %vm858_vm5, nan, %v867_v55  ;;  %v1287_v16 = vsel %vm858_vm5, nan, %v1286_v36  ;;  %v952_v59 = vmul.f32 %v951_v20, %v949_v61  ;;  %vm963_vm5 = vcmp.lt.s32.totalorder %v962_v50, 2 }
 0x124   :  { %v974_v7 = vmul.f32 %v868_v38, %v548_v33  ;;  %v1394_v56 = vmul.f32 %v1287_v16, %v548_v33  ;;  %v1516_v49 = vpop.eup %1515 }
 0x125   :  { %v953_v41 = vxor.u32 2147483648, %v952_v59  ;;  %v550_v40 = vmul.f32 %v1516_v49, %v527_v30 }
 0x126   :  { %v1398_v43 = vmul.f32 0.05, %v974_v7  ;;  %v1410_v2 = vmul.f32 0.05, %v1394_v56 }
 0x127   :  { %v954_v32 = vsel %vm871_vm14, %v953_v41, %v952_v59  ;;  %v552_v45 = vsel %vm551_vm15, %v527_v30, %v550_v40 }
 0x128   :  { %1406 = vst [vmem:[#allocation4 + $0x10] sm:$0xff] %v1398_v43  ;;  %1418 = vst [vmem:[#allocation4 + $0x30] sm:$0xff] %v1410_v2  ;;  %v957_v6 = vsel %vm870_vm13, %v1618_v10, %v954_v32  ;;  %v555_v53 = vsel %vm553_vm1, %v554_v37, %v552_v45 }
 0x129   :  { %1517 = vcosq.f32 %v957_v6 }
 0x12a   :  { %1519 = vsinq.f32 %v957_v6 }
 0x133   :  { %v1518_v1 = vpop.eup %1517 }
 0x134   :  { %v1520_v52 = vpop.eup %1519  ;;  %v968_v47 = vxor.u32 2147483648, %v1518_v1 }
 0x135   :  { %v965_v42 = vxor.u32 2147483648, %v1520_v52 }
 0x136   :  { %v969_v0 = vsel %vm967_vm0, %v968_v47, %v1520_v52  ;;  %v1389_v9 = vsel %vm1387_vm2, %v968_v47, %v1520_v52 }
 0x137   :  { %v966_v54 = vsel %vm964_vm3, %v1518_v1, %v965_v42  ;;  %v1386_v13 = vsel %vm1384_vm4, %v1518_v1, %v965_v42 }
 0x138   :  { %v970_v57 = vsel %vm963_vm5, %v966_v54, %v969_v0  ;;  %v1390_v58 = vsel %vm1383_vm6, %v1386_v13, %v1389_v9 }
 0x139   :  { %v971_v63 = vsel %vm961_vm7, nan, %v970_v57  ;;  %v1391_v14 = vsel %vm961_vm7, nan, %v1390_v58 }
 0x13a   :  { %v975_v3 = vmul.f32 %v971_v63, %v555_v53  ;;  %v1395_v22 = vmul.f32 %v1391_v14, %v555_v53 }
 0x13c   :  { %v1399_v5 = vmul.f32 0.05, %v975_v3  ;;  %v1411_v8 = vmul.f32 0.05, %v1395_v22 }
 0x13e   :  { %1407 = vst [vmem:[#allocation4 + $0x18] sm:$0xff] %v1399_v5  ;;  %1419 = vst [vmem:[#allocation4 + $0x38] sm:$0xff] %v1411_v8 }
 0x13f   :  { %1532 = shalt.err (!%p1529_p4)
}
 0x140   :  { %s1533_s16 = scalar_lea.hbm %s1984_s1, 1024 }
 0x141   :  { %p1534_p5 = scmp.ne.s32.totalorder %s1984_s1, %s1533_s16  ;;  %p1537_p6 = scmp.lt.u32.totalorder %s1533_s16, %s1984_s1 }
 0x143   :  { %p1539_p7 = pnand %p1537_p6, %p1534_p5 }
 0x145   :  { %1542 = shalt.err (!%p1539_p7)
}
 0x146   :  { %1429 = dma.vmem_to_hbm [thread:$0]  %s1427_s12, 1024, %s1984_s1, [#allocation5]  }
 0x147   :  { %1543 = dma.done.wait [#allocation5], 1024  }
 0x148   :  { %1544 = vsyncadd [#allocation5], 4294966272 }
 0x149   :  { %1433 = vsyncpa [#allocation5], 1 }

</bundles_post_ra>
